<compile_context>
chip_gen: v7x
topology: tpu7x:2x2x1
jax: 0.10.0
libtpu: 0.0.40
codegen_flags: <defaults>
</compile_context>

<pallas_src>
import numpy as np
import jax
import jax.numpy as jnp
from jax.experimental import pallas as pl
from jax.experimental.pallas import tpu as pltpu

EPS = 1e-5  # PyTorch BatchNorm2d default eps


# ---------------------------------------------------------------------------
# Fused Pallas kernels
# ---------------------------------------------------------------------------
def _stage1_kernel_factory(H, W, Cin, Cout, has_sc_conv, compute_dtype):
    """Fused: h1 = relu(bn1(x)); c1 = conv3x3(h1, w1); sc = conv1x1(h1, w_sc) | h1."""

    def kernel(x_ref, scale_ref, bias_ref, w1_ref, *rest):
        if has_sc_conv:
            wsc_ref, c1_ref, sc_ref, hp_ref = rest
        else:
            c1_ref, sc_ref, hp_ref = rest

        x = x_ref[...]                                              # (1,H,W,Cin) f32
        h1 = jnp.maximum(x * scale_ref[...] + bias_ref[...], 0.0)   # BN1 + ReLU (f32)
        h1c = h1[0].astype(compute_dtype)                           # (H,W,Cin)

        # --- shortcut branch: consumes h1 from registers, never from HBM ---
        if has_sc_conv:
            sc = jnp.dot(h1c.reshape(H * W, Cin), wsc_ref[...],
                         preferred_element_type=jnp.float32)
            sc_ref[...] = sc.reshape(1, H, W, Cout).astype(sc_ref.dtype)
        else:
            sc_ref[...] = h1.astype(sc_ref.dtype)                   # identity shortcut

        # --- in-kernel zero padding (replaces wrapper jnp.pad) ---
        hp_ref[...] = jnp.zeros(hp_ref.shape, hp_ref.dtype)
        hp_ref[1:H + 1, 1:W + 1, :] = h1c
        hp = hp_ref[...]                                            # (H+2,W+2,Cin)

        # --- 3x3 conv, stride 1: 9 shifted (H*W,Cin)x(Cin,Cout) MXU matmuls, f32 acc ---
        w1 = w1_ref[...]                                            # (3,3,Cin,Cout)
        acc = jnp.zeros((H * W, Cout), jnp.float32)
        for dh in range(3):
            for dw in range(3):
                patch = hp[dh:dh + H, dw:dw + W, :].reshape(H * W, Cin)
                acc = acc + jnp.dot(patch, w1[dh, dw],
                                    preferred_element_type=jnp.float32)
        c1_ref[...] = acc.reshape(1, H, W, Cout).astype(c1_ref.dtype)

    return kernel


def _stage2_kernel_factory(H, W, Cm, Cout, compute_dtype):
    """Fused: h2 = relu(bn2(c1)); out = conv3x3(h2, w2) + shortcut."""

    def kernel(c1_ref, scale_ref, bias_ref, w2_ref, sc_ref, o_ref, hp_ref):
        c1 = c1_ref[...].astype(jnp.float32)                        # (1,H,W,Cm)
        h2 = jnp.maximum(c1 * scale_ref[...] + bias_ref[...], 0.0)  # BN2 + ReLU (f32)
        h2c = h2[0].astype(compute_dtype)                           # (H,W,Cm)

        hp_ref[...] = jnp.zeros(hp_ref.shape, hp_ref.dtype)
        hp_ref[1:H + 1, 1:W + 1, :] = h2c
        hp = hp_ref[...]                                            # (H+2,W+2,Cm)

        w2 = w2_ref[...]                                            # (3,3,Cm,Cout)
        acc = jnp.zeros((H * W, Cout), jnp.float32)
        for dh in range(3):
            for dw in range(3):
                patch = hp[dh:dh + H, dw:dw + W, :].reshape(H * W, Cm)
                acc = acc + jnp.dot(patch, w2[dh, dw],
                                    preferred_element_type=jnp.float32)

        out = acc + sc_ref[...].astype(jnp.float32).reshape(H * W, Cout)
        o_ref[...] = out.reshape(1, H, W, Cout)

    return kernel


# ---------------------------------------------------------------------------
# pallas_call wrappers
# ---------------------------------------------------------------------------
def _stage1(x, scale1, bias1, w1, w_sc, compute_dtype):
    N, H, W, Cin = x.shape
    Cout = w1.shape[-1]
    has_sc = w_sc is not None
    sc_C = Cout if has_sc else Cin

    in_specs = [
        pl.BlockSpec((1, H, W, Cin), lambda n: (n, 0, 0, 0)),
        pl.BlockSpec((1, 1, 1, Cin), lambda n: (0, 0, 0, 0)),
        pl.BlockSpec((1, 1, 1, Cin), lambda n: (0, 0, 0, 0)),
        pl.BlockSpec((3, 3, Cin, Cout), lambda n: (0, 0, 0, 0)),
    ]
    args = [x, scale1, bias1, w1.astype(compute_dtype)]
    if has_sc:
        in_specs.append(pl.BlockSpec((Cin, Cout), lambda n: (0, 0)))
        args.append(w_sc.astype(compute_dtype))

    kernel = _stage1_kernel_factory(H, W, Cin, Cout, has_sc, compute_dtype)
    return pl.pallas_call(
        kernel,
        grid=(N,),
        in_specs=in_specs,
        out_specs=(
            pl.BlockSpec((1, H, W, Cout), lambda n: (n, 0, 0, 0)),
            pl.BlockSpec((1, H, W, sc_C), lambda n: (n, 0, 0, 0)),
        ),
        out_shape=(
            jax.ShapeDtypeStruct((N, H, W, Cout), compute_dtype),  # c1
            jax.ShapeDtypeStruct((N, H, W, sc_C), compute_dtype),  # shortcut
        ),
        scratch_shapes=[pltpu.VMEM((H + 2, W + 2, Cin), compute_dtype)],
        compiler_params=pltpu.CompilerParams(dimension_semantics=("parallel",)),
    )(*args)


def _stage2(c1, sc, scale2, bias2, w2, compute_dtype):
    N, H, W, Cm = c1.shape
    Cout = w2.shape[-1]

    kernel = _stage2_kernel_factory(H, W, Cm, Cout, compute_dtype)
    return pl.pallas_call(
        kernel,
        grid=(N,),
        in_specs=[
            pl.BlockSpec((1, H, W, Cm), lambda n: (n, 0, 0, 0)),
            pl.BlockSpec((1, 1, 1, Cm), lambda n: (0, 0, 0, 0)),
            pl.BlockSpec((1, 1, 1, Cm), lambda n: (0, 0, 0, 0)),
            pl.BlockSpec((3, 3, Cm, Cout), lambda n: (0, 0, 0, 0)),
            pl.BlockSpec((1, H, W, Cout), lambda n: (n, 0, 0, 0)),
        ],
        out_specs=pl.BlockSpec((1, H, W, Cout), lambda n: (n, 0, 0, 0)),
        out_shape=jax.ShapeDtypeStruct((N, H, W, Cout), jnp.float32),
        scratch_shapes=[pltpu.VMEM((H + 2, W + 2, Cm), compute_dtype)],
        compiler_params=pltpu.CompilerParams(dimension_semantics=("parallel",)),
    )(c1, scale2, bias2, w2.astype(compute_dtype), sc)


def preact_block_forward(x_nchw, params, compute_dtype=jnp.bfloat16):
    """PreActBlock forward (stride=1).  x: (N, C, H, W) NCHW, returns NCHW."""
    x = jnp.transpose(x_nchw, (0, 2, 3, 1)).astype(jnp.float32)     # NCHW -> NHWC
    c1, sc = _stage1(x, params["scale1"], params["bias1"], params["w1"],
                     params["w_sc"], compute_dtype)
    out = _stage2(c1, sc, params["scale2"], params["bias2"], params["w2"],
                  compute_dtype)
    return jnp.transpose(out, (0, 3, 1, 2))                         # NHWC -> NCHW


# ---------------------------------------------------------------------------
# Pure-JAX reference (for validation)
# ---------------------------------------------------------------------------
def reference_forward(x_nchw, raw):
    x = jnp.transpose(x_nchw, (0, 2, 3, 1)).astype(jnp.float32)

    def bn_relu(v, g, b, m, var):
        return jnp.maximum((v - m) / jnp.sqrt(var + EPS) * g + b, 0.0)

    def conv(v, w):
        dn = jax.lax.conv_dimension_numbers(v.shape, w.shape,
                                            ("NHWC", "HWIO", "NHWC"))
        pad = "SAME" if w.shape[0] == 3 else "VALID"
        return jax.lax.conv_general_dilated(v, w, (1, 1), pad,
                                            dimension_numbers=dn)

    h1 = bn_relu(x, raw["g1"], raw["b1"], raw["m1"], raw["v1"])
    sc = conv(h1, raw["w_sc_hwio"]) if raw["w_sc_hwio"] is not None else h1
    c1 = conv(h1, raw["w1"])
    h2 = bn_relu(c1, raw["g2"], raw["b2"], raw["m2"], raw["v2"])
    out = conv(h2, raw["w2"]) + sc
    return jnp.transpose(out, (0, 3, 1, 2))


# ---------------------------------------------------------------------------
# Parameter construction (inference-mode BN folded into scale/bias)
# ---------------------------------------------------------------------------
def make_params(key, in_planes, planes, with_sc_conv):
    ks = jax.random.split(key, 11)
    g1 = 1.0 + 0.1 * jax.random.normal(ks[0], (in_planes,), jnp.float32)
    b1 = 0.1 * jax.random.normal(ks[1], (in_planes,), jnp.float32)
    m1 = 0.1 * jax.random.normal(ks[2], (in_planes,), jnp.float32)
    v1 = 0.5 + jnp.abs(jax.random.normal(ks[3], (in_planes,), jnp.float32))
    g2 = 1.0 + 0.1 * jax.random.normal(ks[4], (planes,), jnp.float32)
    b2 = 0.1 * jax.random.normal(ks[5], (planes,), jnp.float32)
    m2 = 0.1 * jax.random.normal(ks[6], (planes,), jnp.float32)
    v2 = 0.5 + jnp.abs(jax.random.normal(ks[7], (planes,), jnp.float32))
    w1 = 0.2 * jax.random.normal(ks[8], (3, 3, in_planes, planes), jnp.float32)
    w2 = 0.2 * jax.random.normal(ks[9], (3, 3, planes, planes), jnp.float32)
    w_sc_hwio = (0.2 * jax.random.normal(ks[10], (1, 1, in_planes, planes),
                                         jnp.float32)
                 if with_sc_conv else None)

    s1 = g1 / jnp.sqrt(v1 + EPS)
    s2 = g2 / jnp.sqrt(v2 + EPS)
    params = {
        "scale1": s1.reshape(1, 1, 1, in_planes),
        "bias1": (b1 - m1 * s1).reshape(1, 1, 1, in_planes),
        "scale2": s2.reshape(1, 1, 1, planes),
        "bias2": (b2 - m2 * s2).reshape(1, 1, 1, planes),
        "w1": w1,
        "w2": w2,
        "w_sc": (w_sc_hwio.reshape(in_planes, planes) if with_sc_conv else None),
    }
    raw = {"g1": g1, "b1": b1, "m1": m1, "v1": v1,
           "g2": g2, "b2": b2, "m2": m2, "v2": v2,
           "w1": w1, "w2": w2, "w_sc_hwio": w_sc_hwio}
    return params, raw


# ---------------------------------------------------------------------------
if __name__ == "__main__":
    N, H, W = 2, 16, 16
    key = jax.random.PRNGKey(0)
    k_x1, k_p1, k_x2, k_p2 = jax.random.split(key, 4)

    configs = [
        # (name, in_planes, planes, x_key, param_key)
        ("proj_shortcut", 4, 8, k_x1, k_p1),       # in_planes != planes -> 1x1 shortcut
        ("identity_shortcut", 8, 8, k_x2, k_p2),   # in_planes == planes -> identity
    ]

    for name, in_planes, planes, kx, kp in configs:
        x = jax.random.normal(kx, (N, in_planes, H, W), dtype=jnp.float32)
        params, raw = make_params(kp, in_planes, planes,
                                  with_sc_conv=(in_planes != planes))

        ref = jax.block_until_ready(reference_forward(x, raw))

        # f32 compute path: exact algorithm check against the XLA reference.
        out_f32 = jax.block_until_ready(
            preact_block_forward(x, params, compute_dtype=jnp.float32))
        np.testing.assert_allclose(np.asarray(out_f32), np.asarray(ref),
                                   rtol=1e-4, atol=1e-4)

        # bf16 MXU path (the fast path): tolerance widened for bf16 operand rounding.
        out_bf16 = jax.block_until_ready(
            preact_block_forward(x, params, compute_dtype=jnp.bfloat16))
        np.testing.assert_allclose(np.asarray(out_bf16), np.asarray(ref),
                                   rtol=5e-2, atol=1e-1)

        assert out_f32.shape == (N, planes, H, W)

    print("KERNEL_OK")
</pallas_src>

<mosaic_0001>
module attributes {stable_mosaic.version = 11 : i64} {
  func.func @kernel(%arg0: i32, %arg1: memref<1x16x16x4xf32, #tpu.memory_space<vmem>>, %arg2: memref<1x1x1x4xf32, #tpu.memory_space<vmem>>, %arg3: memref<1x1x1x4xf32, #tpu.memory_space<vmem>>, %arg4: memref<3x3x4x8xf32, #tpu.memory_space<vmem>>, %arg5: memref<4x8xf32, #tpu.memory_space<vmem>>, %arg6: memref<1x16x16x8xf32, #tpu.memory_space<vmem>>, %arg7: memref<1x16x16x8xf32, #tpu.memory_space<vmem>>, %arg8: memref<18x18x4xf32, #tpu.memory_space<vmem>>) attributes {dimension_semantics = [#tpu.dimension_semantics<parallel>], iteration_bounds = array<i64: 2>, scalar_prefetch = 0 : i64, scratch_operands = 1 : i64, tpu.core_type = #tpu.core_type<tc>, window_params = [{transform_indices = @transform_0, window_bounds = array<i64: 1, 16, 16, 4>}, {pipeline_mode = #tpu.pipeline_mode<synchronous>, transform_indices = @transform_1, window_bounds = array<i64: 1, 1, 1, 4>}, {pipeline_mode = #tpu.pipeline_mode<synchronous>, transform_indices = @transform_2, window_bounds = array<i64: 1, 1, 1, 4>}, {pipeline_mode = #tpu.pipeline_mode<synchronous>, transform_indices = @transform_3, window_bounds = array<i64: 3, 3, 4, 8>}, {pipeline_mode = #tpu.pipeline_mode<synchronous>, transform_indices = @transform_4, window_bounds = array<i64: 4, 8>}, {transform_indices = @transform_5, window_bounds = array<i64: 1, 16, 16, 8>}, {transform_indices = @transform_6, window_bounds = array<i64: 1, 16, 16, 8>}]} {
    %c0 = arith.constant 0 : index
    %c0_0 = arith.constant 0 : index
    %c0_1 = arith.constant 0 : index
    %c0_2 = arith.constant 0 : index
    %0 = vector.load %arg1[%c0, %c0_0, %c0_1, %c0_2] : memref<1x16x16x4xf32, #tpu.memory_space<vmem>>, vector<1x16x16x4xf32>
    %c0_3 = arith.constant 0 : index
    %c0_4 = arith.constant 0 : index
    %c0_5 = arith.constant 0 : index
    %c0_6 = arith.constant 0 : index
    %1 = vector.load %arg2[%c0_3, %c0_4, %c0_5, %c0_6] : memref<1x1x1x4xf32, #tpu.memory_space<vmem>>, vector<1x1x1x4xf32>
    %2 = vector.broadcast %1 : vector<1x1x1x4xf32> to vector<1x16x16x4xf32>
    %3 = arith.mulf %0, %2 : vector<1x16x16x4xf32>
    %c0_7 = arith.constant 0 : index
    %c0_8 = arith.constant 0 : index
    %c0_9 = arith.constant 0 : index
    %c0_10 = arith.constant 0 : index
    %4 = vector.load %arg3[%c0_7, %c0_8, %c0_9, %c0_10] : memref<1x1x1x4xf32, #tpu.memory_space<vmem>>, vector<1x1x1x4xf32>
    %5 = vector.broadcast %4 : vector<1x1x1x4xf32> to vector<1x16x16x4xf32>
    %6 = arith.addf %3, %5 : vector<1x16x16x4xf32>
    %cst = arith.constant 0.000000e+00 : f32
    %7 = vector.broadcast %cst : f32 to vector<1x16x16x4xf32>
    %8 = arith.maximumf %6, %7 : vector<1x16x16x4xf32>
    %9 = vector.shape_cast %8 : vector<1x16x16x4xf32> to vector<16x16x4xf32>
    %10 = vector.shape_cast %9 : vector<16x16x4xf32> to vector<256x4xf32>
    %c0_11 = arith.constant 0 : index
    %c0_12 = arith.constant 0 : index
    %11 = vector.load %arg5[%c0_11, %c0_12] : memref<4x8xf32, #tpu.memory_space<vmem>>, vector<4x8xf32>
    %cst_13 = arith.constant dense<0.000000e+00> : vector<256x8xf32>
    %12 = tpu.matmul %10, %11, %cst_13 {dimension_numbers = #tpu.dot_dimension_numbers<[1], [0], [0], [1], [0, 0, 1, 1], [], []>} : vector<256x4xf32>, vector<4x8xf32>, vector<256x8xf32> -> vector<256x8xf32>
    %13 = vector.shape_cast %12 : vector<256x8xf32> to vector<1x16x16x8xf32>
    %c0_14 = arith.constant 0 : index
    %c0_15 = arith.constant 0 : index
    %c0_16 = arith.constant 0 : index
    %c0_17 = arith.constant 0 : index
    %14 = vector.load %arg7[%c0_14, %c0_15, %c0_16, %c0_17] : memref<1x16x16x8xf32, #tpu.memory_space<vmem>>, vector<1x16x16x8xf32>
    tpu.vector_store %arg7[%c0_14, %c0_15, %c0_16, %c0_17], %13 {strides = array<i32>} : memref<1x16x16x8xf32, #tpu.memory_space<vmem>>, vector<1x16x16x8xf32>,
    %cst_18 = arith.constant 0.000000e+00 : f32
    %15 = vector.broadcast %cst_18 : f32 to vector<18x18x4xf32>
    %c0_19 = arith.constant 0 : index
    %c0_20 = arith.constant 0 : index
    %c0_21 = arith.constant 0 : index
    %16 = vector.load %arg8[%c0_19, %c0_20, %c0_21] : memref<18x18x4xf32, #tpu.memory_space<vmem>>, vector<18x18x4xf32>
    tpu.vector_store %arg8[%c0_19, %c0_20, %c0_21], %15 {strides = array<i32>} : memref<18x18x4xf32, #tpu.memory_space<vmem>>, vector<18x18x4xf32>,
    %c1 = arith.constant 1 : index
    %c1_22 = arith.constant 1 : index
    %c0_23 = arith.constant 0 : index
    %17 = vector.load %arg8[%c1, %c1_22, %c0_23] : memref<18x18x4xf32, #tpu.memory_space<vmem>>, vector<16x16x4xf32>
    tpu.vector_store %arg8[%c1, %c1_22, %c0_23], %9 {strides = array<i32>} : memref<18x18x4xf32, #tpu.memory_space<vmem>>, vector<16x16x4xf32>,
    %c0_24 = arith.constant 0 : index
    %c0_25 = arith.constant 0 : index
    %c0_26 = arith.constant 0 : index
    %18 = vector.load %arg8[%c0_24, %c0_25, %c0_26] : memref<18x18x4xf32, #tpu.memory_space<vmem>>, vector<18x18x4xf32>
    %c0_27 = arith.constant 0 : index
    %c0_28 = arith.constant 0 : index
    %c0_29 = arith.constant 0 : index
    %c0_30 = arith.constant 0 : index
    %19 = vector.load %arg4[%c0_27, %c0_28, %c0_29, %c0_30] : memref<3x3x4x8xf32, #tpu.memory_space<vmem>>, vector<3x3x4x8xf32>
    %cst_31 = arith.constant 0.000000e+00 : f32
    %20 = vector.broadcast %cst_31 : f32 to vector<256x8xf32>
    %21 = vector.extract_strided_slice %18 {offsets = [0, 0, 0], sizes = [16, 16, 4], strides = [1, 1, 1]} : vector<18x18x4xf32> to vector<16x16x4xf32>
    %22 = vector.shape_cast %21 : vector<16x16x4xf32> to vector<256x4xf32>
    %23 = vector.extract_strided_slice %19 {offsets = [0, 0, 0, 0], sizes = [1, 1, 4, 8], strides = [1, 1, 1, 1]} : vector<3x3x4x8xf32> to vector<1x1x4x8xf32>
    %24 = vector.shape_cast %23 : vector<1x1x4x8xf32> to vector<4x8xf32>
    %cst_32 = arith.constant dense<0.000000e+00> : vector<256x8xf32>
    %25 = tpu.matmul %22, %24, %cst_32 {dimension_numbers = #tpu.dot_dimension_numbers<[1], [0], [0], [1], [0, 0, 1, 1], [], []>} : vector<256x4xf32>, vector<4x8xf32>, vector<256x8xf32> -> vector<256x8xf32>
    %26 = arith.addf %20, %25 : vector<256x8xf32>
    %27 = vector.extract_strided_slice %18 {offsets = [0, 1, 0], sizes = [16, 16, 4], strides = [1, 1, 1]} : vector<18x18x4xf32> to vector<16x16x4xf32>
    %28 = vector.shape_cast %27 : vector<16x16x4xf32> to vector<256x4xf32>
    %29 = vector.extract_strided_slice %19 {offsets = [0, 1, 0, 0], sizes = [1, 1, 4, 8], strides = [1, 1, 1, 1]} : vector<3x3x4x8xf32> to vector<1x1x4x8xf32>
    %30 = vector.shape_cast %29 : vector<1x1x4x8xf32> to vector<4x8xf32>
    %cst_33 = arith.constant dense<0.000000e+00> : vector<256x8xf32>
    %31 = tpu.matmul %28, %30, %cst_33 {dimension_numbers = #tpu.dot_dimension_numbers<[1], [0], [0], [1], [0, 0, 1, 1], [], []>} : vector<256x4xf32>, vector<4x8xf32>, vector<256x8xf32> -> vector<256x8xf32>
    %32 = arith.addf %26, %31 : vector<256x8xf32>
    %33 = vector.extract_strided_slice %18 {offsets = [0, 2, 0], sizes = [16, 16, 4], strides = [1, 1, 1]} : vector<18x18x4xf32> to vector<16x16x4xf32>
    %34 = vector.shape_cast %33 : vector<16x16x4xf32> to vector<256x4xf32>
    %35 = vector.extract_strided_slice %19 {offsets = [0, 2, 0, 0], sizes = [1, 1, 4, 8], strides = [1, 1, 1, 1]} : vector<3x3x4x8xf32> to vector<1x1x4x8xf32>
    %36 = vector.shape_cast %35 : vector<1x1x4x8xf32> to vector<4x8xf32>
    %cst_34 = arith.constant dense<0.000000e+00> : vector<256x8xf32>
    %37 = tpu.matmul %34, %36, %cst_34 {dimension_numbers = #tpu.dot_dimension_numbers<[1], [0], [0], [1], [0, 0, 1, 1], [], []>} : vector<256x4xf32>, vector<4x8xf32>, vector<256x8xf32> -> vector<256x8xf32>
    %38 = arith.addf %32, %37 : vector<256x8xf32>
    %39 = vector.extract_strided_slice %18 {offsets = [1, 0, 0], sizes = [16, 16, 4], strides = [1, 1, 1]} : vector<18x18x4xf32> to vector<16x16x4xf32>
    %40 = vector.shape_cast %39 : vector<16x16x4xf32> to vector<256x4xf32>
    %41 = vector.extract_strided_slice %19 {offsets = [1, 0, 0, 0], sizes = [1, 1, 4, 8], strides = [1, 1, 1, 1]} : vector<3x3x4x8xf32> to vector<1x1x4x8xf32>
    %42 = vector.shape_cast %41 : vector<1x1x4x8xf32> to vector<4x8xf32>
    %cst_35 = arith.constant dense<0.000000e+00> : vector<256x8xf32>
    %43 = tpu.matmul %40, %42, %cst_35 {dimension_numbers = #tpu.dot_dimension_numbers<[1], [0], [0], [1], [0, 0, 1, 1], [], []>} : vector<256x4xf32>, vector<4x8xf32>, vector<256x8xf32> -> vector<256x8xf32>
    %44 = arith.addf %38, %43 : vector<256x8xf32>
    %45 = vector.extract_strided_slice %18 {offsets = [1, 1, 0], sizes = [16, 16, 4], strides = [1, 1, 1]} : vector<18x18x4xf32> to vector<16x16x4xf32>
    %46 = vector.shape_cast %45 : vector<16x16x4xf32> to vector<256x4xf32>
    %47 = vector.extract_strided_slice %19 {offsets = [1, 1, 0, 0], sizes = [1, 1, 4, 8], strides = [1, 1, 1, 1]} : vector<3x3x4x8xf32> to vector<1x1x4x8xf32>
    %48 = vector.shape_cast %47 : vector<1x1x4x8xf32> to vector<4x8xf32>
    %cst_36 = arith.constant dense<0.000000e+00> : vector<256x8xf32>
    %49 = tpu.matmul %46, %48, %cst_36 {dimension_numbers = #tpu.dot_dimension_numbers<[1], [0], [0], [1], [0, 0, 1, 1], [], []>} : vector<256x4xf32>, vector<4x8xf32>, vector<256x8xf32> -> vector<256x8xf32>
    %50 = arith.addf %44, %49 : vector<256x8xf32>
    %51 = vector.extract_strided_slice %18 {offsets = [1, 2, 0], sizes = [16, 16, 4], strides = [1, 1, 1]} : vector<18x18x4xf32> to vector<16x16x4xf32>
    %52 = vector.shape_cast %51 : vector<16x16x4xf32> to vector<256x4xf32>
    %53 = vector.extract_strided_slice %19 {offsets = [1, 2, 0, 0], sizes = [1, 1, 4, 8], strides = [1, 1, 1, 1]} : vector<3x3x4x8xf32> to vector<1x1x4x8xf32>
    %54 = vector.shape_cast %53 : vector<1x1x4x8xf32> to vector<4x8xf32>
    %cst_37 = arith.constant dense<0.000000e+00> : vector<256x8xf32>
    %55 = tpu.matmul %52, %54, %cst_37 {dimension_numbers = #tpu.dot_dimension_numbers<[1], [0], [0], [1], [0, 0, 1, 1], [], []>} : vector<256x4xf32>, vector<4x8xf32>, vector<256x8xf32> -> vector<256x8xf32>
    %56 = arith.addf %50, %55 : vector<256x8xf32>
    %57 = vector.extract_strided_slice %18 {offsets = [2, 0, 0], sizes = [16, 16, 4], strides = [1, 1, 1]} : vector<18x18x4xf32> to vector<16x16x4xf32>
    %58 = vector.shape_cast %57 : vector<16x16x4xf32> to vector<256x4xf32>
    %59 = vector.extract_strided_slice %19 {offsets = [2, 0, 0, 0], sizes = [1, 1, 4, 8], strides = [1, 1, 1, 1]} : vector<3x3x4x8xf32> to vector<1x1x4x8xf32>
    %60 = vector.shape_cast %59 : vector<1x1x4x8xf32> to vector<4x8xf32>
    %cst_38 = arith.constant dense<0.000000e+00> : vector<256x8xf32>
    %61 = tpu.matmul %58, %60, %cst_38 {dimension_numbers = #tpu.dot_dimension_numbers<[1], [0], [0], [1], [0, 0, 1, 1], [], []>} : vector<256x4xf32>, vector<4x8xf32>, vector<256x8xf32> -> vector<256x8xf32>
    %62 = arith.addf %56, %61 : vector<256x8xf32>
    %63 = vector.extract_strided_slice %18 {offsets = [2, 1, 0], sizes = [16, 16, 4], strides = [1, 1, 1]} : vector<18x18x4xf32> to vector<16x16x4xf32>
    %64 = vector.shape_cast %63 : vector<16x16x4xf32> to vector<256x4xf32>
    %65 = vector.extract_strided_slice %19 {offsets = [2, 1, 0, 0], sizes = [1, 1, 4, 8], strides = [1, 1, 1, 1]} : vector<3x3x4x8xf32> to vector<1x1x4x8xf32>
    %66 = vector.shape_cast %65 : vector<1x1x4x8xf32> to vector<4x8xf32>
    %cst_39 = arith.constant dense<0.000000e+00> : vector<256x8xf32>
    %67 = tpu.matmul %64, %66, %cst_39 {dimension_numbers = #tpu.dot_dimension_numbers<[1], [0], [0], [1], [0, 0, 1, 1], [], []>} : vector<256x4xf32>, vector<4x8xf32>, vector<256x8xf32> -> vector<256x8xf32>
    %68 = arith.addf %62, %67 : vector<256x8xf32>
    %69 = vector.extract_strided_slice %18 {offsets = [2, 2, 0], sizes = [16, 16, 4], strides = [1, 1, 1]} : vector<18x18x4xf32> to vector<16x16x4xf32>
    %70 = vector.shape_cast %69 : vector<16x16x4xf32> to vector<256x4xf32>
    %71 = vector.extract_strided_slice %19 {offsets = [2, 2, 0, 0], sizes = [1, 1, 4, 8], strides = [1, 1, 1, 1]} : vector<3x3x4x8xf32> to vector<1x1x4x8xf32>
    %72 = vector.shape_cast %71 : vector<1x1x4x8xf32> to vector<4x8xf32>
    %cst_40 = arith.constant dense<0.000000e+00> : vector<256x8xf32>
    %73 = tpu.matmul %70, %72, %cst_40 {dimension_numbers = #tpu.dot_dimension_numbers<[1], [0], [0], [1], [0, 0, 1, 1], [], []>} : vector<256x4xf32>, vector<4x8xf32>, vector<256x8xf32> -> vector<256x8xf32>
    %74 = arith.addf %68, %73 : vector<256x8xf32>
    %75 = vector.shape_cast %74 : vector<256x8xf32> to vector<1x16x16x8xf32>
    %c0_41 = arith.constant 0 : index
    %c0_42 = arith.constant 0 : index
    %c0_43 = arith.constant 0 : index
    %c0_44 = arith.constant 0 : index
    %76 = vector.load %arg6[%c0_41, %c0_42, %c0_43, %c0_44] : memref<1x16x16x8xf32, #tpu.memory_space<vmem>>, vector<1x16x16x8xf32>
    tpu.vector_store %arg6[%c0_41, %c0_42, %c0_43, %c0_44], %75 {strides = array<i32>} : memref<1x16x16x8xf32, #tpu.memory_space<vmem>>, vector<1x16x16x8xf32>,
    return
  }
  func.func @transform_0(%arg0: i32) -> (i32, i32, i32, i32) {
    %c0_i32 = arith.constant 0 : i32
    %c0_i32_0 = arith.constant 0 : i32
    %c0_i32_1 = arith.constant 0 : i32
    %c0_i32_2 = arith.constant 0 : i32
    return %arg0, %c0_i32, %c0_i32_0, %c0_i32_1 : i32, i32, i32, i32
  }
  func.func @transform_1(%arg0: i32) -> (i32, i32, i32, i32) {
    %c0_i32 = arith.constant 0 : i32
    %c0_i32_0 = arith.constant 0 : i32
    %c0_i32_1 = arith.constant 0 : i32
    %c0_i32_2 = arith.constant 0 : i32
    %c0_i32_3 = arith.constant 0 : i32
    return %c0_i32, %c0_i32_0, %c0_i32_1, %c0_i32_2 : i32, i32, i32, i32
  }
  func.func @transform_2(%arg0: i32) -> (i32, i32, i32, i32) {
    %c0_i32 = arith.constant 0 : i32
    %c0_i32_0 = arith.constant 0 : i32
    %c0_i32_1 = arith.constant 0 : i32
    %c0_i32_2 = arith.constant 0 : i32
    %c0_i32_3 = arith.constant 0 : i32
    return %c0_i32, %c0_i32_0, %c0_i32_1, %c0_i32_2 : i32, i32, i32, i32
  }
  func.func @transform_3(%arg0: i32) -> (i32, i32, i32, i32) {
    %c0_i32 = arith.constant 0 : i32
    %c0_i32_0 = arith.constant 0 : i32
    %c0_i32_1 = arith.constant 0 : i32
    %c0_i32_2 = arith.constant 0 : i32
    %c0_i32_3 = arith.constant 0 : i32
    return %c0_i32, %c0_i32_0, %c0_i32_1, %c0_i32_2 : i32, i32, i32, i32
  }
  func.func @transform_4(%arg0: i32) -> (i32, i32) {
    %c0_i32 = arith.constant 0 : i32
    %c0_i32_0 = arith.constant 0 : i32
    %c0_i32_1 = arith.constant 0 : i32
    return %c0_i32, %c0_i32_0 : i32, i32
  }
  func.func @transform_5(%arg0: i32) -> (i32, i32, i32, i32) {
    %c0_i32 = arith.constant 0 : i32
    %c0_i32_0 = arith.constant 0 : i32
    %c0_i32_1 = arith.constant 0 : i32
    %c0_i32_2 = arith.constant 0 : i32
    return %arg0, %c0_i32, %c0_i32_0, %c0_i32_1 : i32, i32, i32, i32
  }
  func.func @transform_6(%arg0: i32) -> (i32, i32, i32, i32) {
    %c0_i32 = arith.constant 0 : i32
    %c0_i32_0 = arith.constant 0 : i32
    %c0_i32_1 = arith.constant 0 : i32
    %c0_i32_2 = arith.constant 0 : i32
    return %arg0, %c0_i32, %c0_i32_0, %c0_i32_1 : i32, i32, i32, i32
  }
}

</mosaic_0001>

<bundles_post_ra>
// kernel: tpu_custom_call.1
= control target key start
LH: loop header
LB: loop body
LE: loop exit
PB: predicated region body
PF: predicated region fallthrough
CT: control target
= control target key end

     0   :  { %s5271_s21 = smov 0   ;;  %s6894_s0 = inlined_call_operand.vmem [shape: f32[2,16,16,4], index: 0, kind: input, shape index: {}]   ;;  %s6895_s1 = inlined_call_operand.vmem [shape: f32[1,1,1,4], index: 1, kind: input, shape index: {}]   ;;  %s6896_s2 = inlined_call_operand.vmem [shape: f32[1,1,1,4], index: 2, kind: input, shape index: {}]   ;;  %s6897_s3 = inlined_call_operand.vmem [shape: f32[3,3,4,8], index: 3, kind: input, shape index: {}]   ;;  %s6898_s4 = inlined_call_operand.vmem [shape: f32[4,8], index: 4, kind: input, shape index: {}]   ;;  %s6899_s5 = inlined_call_operand.vmem [shape: f32[2,16,16,8], index: 5, kind: output, shape index: {0}]   ;;  %s6900_s6 = inlined_call_operand.vmem [shape: f32[2,16,16,8], index: 6, kind: output, shape index: {1}]  }
   0x1 LB: > { %s3766_s22 = sadd.s32 4294967295, %s5233_s21   ;;  %p3770_p0 = scmp.ge.s32.totalorder %s5233_s21, 1  ;;  %s5233_s21 = sphi %s5271_s21, %s17_s21  }
   0x2   : > { %p215_p1 = scmp.lt.s32.totalorder %s5233_s21, 3 }
   0x4   : > { %p216_p2 = pnand %p3770_p0, %p215_p1 }
   0x6   : > { %219 = sbr.rel (%p216_p2) target bundleno = 586 (0x24a), region = 40 }
   0xd   : > { %v407_v0 = vld [vmem:[%s6898_s4] sm:$0xf]  ;;  %vm505_vm0 = vcmask 1043456   ;;  %p250_p3 = scmp.lt.s32.totalorder %s3766_s22, 1  ;;  %vm408_vm1 = vcmask 31744   ;;  %vm769_vm2 = vcmask 25600  }
   0xe   : > { %4444 = vmatprep.subr.msk.mxu0 %vm505_vm0, %v407_v0  ;;  %v5235_v1 = vmov 0.0   ;;  %v913_v2 = vld [vmem:[%s6897_s3 + $0x10] sm:$0xf]  ;;  %v5346_v3 = vld [vmem:[%s6897_s3 + $0x4] sm:$0xf]  ;;  %vm966_vm3 = vcmask 1046528  }
   0xf   : > { %4445 = vmatpush3.msk.msra.mxu0 %vm505_vm0, %v407_v0  ;;  %s7176_s22 = smov (!%p250_p3, %s3766_s22), 1  ;;  %771 = vst.msk [vmem:[#allocation2 + $0x18] sm:$0xff] %vm408_vm1, %v5235_v1  ;;  %772 = vst.msk [vmem:[#allocation2 + $0x20] sm:$0xff] %vm408_vm1, %v5235_v1  ;;  %4694 = vmatprep.subr.msk.mxu1 %vm505_vm0, %v913_v2  ;;  %v5354_v4 = vld [vmem:[%s6897_s3 + $0x14] sm:$0xf]  ;;  %vm1631_vm4 = vcmask 1045504  }
  0x10   : > { %767 = vst.msk [vmem:[#allocation2] sm:$0xff] %vm408_vm1, %v5235_v1  ;;  %768 = vst.msk [vmem:[#allocation2 + $0x8] sm:$0xff] %vm408_vm1, %v5235_v1  ;;  %4494 = vmatprep.subr.msk.mxu0 %vm505_vm0, %v5346_v3  ;;  %s5357_s7 = sshll.u32 %s7176_s22, 8  ;;  %v5362_v5 = vld [vmem:[%s6895_s1] ss:$0 sm:$0xff]  ;;  %4695 = vmatpush3.msk.msra.mxu1 %vm505_vm0, %v913_v2  ;;  %vm734_vm5 = vcmask 64512  }
  0x11   : > { %774 = vst.msk [vmem:[#allocation2 + $0x30] sm:$0xff] %vm408_vm1, %v5235_v1  ;;  %775 = vst.msk [vmem:[#allocation2 + $0x38] sm:$0xff] %vm408_vm1, %v5235_v1  ;;  %s5369_s12 = scalar_lea.vmem %s6894_s0, %s5357_s7  ;;  %v5374_v6 = vld [vmem:[%s6896_s2] ss:$0 sm:$0xff]  ;;  %4744 = vmatprep.subr.msk.mxu1 %vm505_vm0, %v5354_v4  ;;  %s6541_s30 = scalar_lea.vmem %s6900_s6, %s5357_s7 }
  0x12   : > { %777 = vst.msk [vmem:[#allocation2 + $0x48] sm:$0xff] %vm408_vm1, %v5235_v1  ;;  %778 = vst.msk [vmem:[#allocation2 + $0x50] sm:$0xff] %vm408_vm1, %v5235_v1  ;;  %v265_v7 = vld [vmem:[%s5369_s12] sm:$0xff]  ;;  %v266_v8 = vld [vmem:[%s5369_s12 + $0x8] sm:$0xff]  ;;  %s6825_s10 = scalar_lea.vmem %s6899_s5, %s5357_s7 }
  0x13   : > { %780 = vst.msk [vmem:[#allocation2 + $0x60] sm:$0xff] %vm408_vm1, %v5235_v1  ;;  %781 = vst.msk [vmem:[#allocation2 + $0x68] sm:$0xff] %vm408_vm1, %v5235_v1  ;;  %v267_v9 = vld [vmem:[%s5369_s12 + $0x10] sm:$0xff]  ;;  %v304_v10 = vmul.f32 %v5362_v5, %v265_v7  ;;  %v305_v11 = vmul.f32 %v5362_v5, %v266_v8  ;;  %v268_v13 = vld [vmem:[%s5369_s12 + $0x18] sm:$0xff] }
  0x14   : > { %783 = vst.msk [vmem:[#allocation2 + $0x78] sm:$0xff] %vm408_vm1, %v5235_v1  ;;  %784 = vst.msk [vmem:[#allocation2 + $0x80] sm:$0xff] %vm408_vm1, %v5235_v1  ;;  %v306_v12 = vmul.f32 %v5362_v5, %v267_v9  ;;  %v269_v14 = vld [vmem:[%s5369_s12 + $0x20] sm:$0xff]  ;;  %v270_v15 = vld [vmem:[%s5369_s12 + $0x28] sm:$0xff]  ;;  %v307_v16 = vmul.f32 %v5362_v5, %v268_v13 }
  0x15   : > { %786 = vst.msk [vmem:[#allocation2 + $0x90] sm:$0xff] %vm408_vm1, %v5235_v1  ;;  %787 = vst.msk [vmem:[#allocation2 + $0x98] sm:$0xff] %vm408_vm1, %v5235_v1  ;;  %v308_v17 = vmul.f32 %v5362_v5, %v269_v14  ;;  %v309_v18 = vmul.f32 %v5362_v5, %v270_v15  ;;  %v271_v19 = vld [vmem:[%s5369_s12 + $0x30] sm:$0xff]  ;;  %v272_v20 = vld [vmem:[%s5369_s12 + $0x38] sm:$0xff]  ;;  %v343_v21 = vadd.f32 %v5374_v6, %v304_v10 }
  0x16   : > { %789 = vst.msk [vmem:[#allocation2 + $0xa8] sm:$0xff] %vm408_vm1, %v5235_v1  ;;  %790 = vst.msk [vmem:[#allocation2 + $0xb0] sm:$0xff] %vm408_vm1, %v5235_v1  ;;  %v344_v22 = vadd.f32 %v5374_v6, %v305_v11  ;;  %v345_v23 = vadd.f32 %v5374_v6, %v306_v12  ;;  %v310_v24 = vmul.f32 %v5362_v5, %v271_v19  ;;  %v273_v29 = vld [vmem:[%s5369_s12 + $0x40] sm:$0xff]  ;;  %v274_v30 = vld [vmem:[%s5369_s12 + $0x48] sm:$0xff] }
  0x17   : > { %792 = vst.msk [vmem:[#allocation2 + $0xc0] sm:$0xff] %vm408_vm1, %v5235_v1  ;;  %793 = vst.msk [vmem:[#allocation2 + $0xc8] sm:$0xff] %vm408_vm1, %v5235_v1  ;;  %v346_v25 = vadd.f32 %v5374_v6, %v307_v16  ;;  %v347_v26 = vadd.f32 %v5374_v6, %v308_v17  ;;  %v5399_v27 = vadd.f32 %v5374_v6, %v309_v18  ;;  %v275_v31 = vld [vmem:[%s5369_s12 + $0x50] sm:$0xff]  ;;  %v375_v32 = vmax.f32 %v343_v21, 0.0  ;;  %v276_v36 = vld [vmem:[%s5369_s12 + $0x58] sm:$0xff] }
  0x18   : > { %795 = vst.msk [vmem:[#allocation2 + $0xd8] sm:$0xff] %vm408_vm1, %v5235_v1  ;;  %796 = vst.msk [vmem:[#allocation2 + $0xe0] sm:$0xff] %vm408_vm1, %v5235_v1  ;;  %v311_v28 = vmul.f32 %v5362_v5, %v272_v20  ;;  %v376_v33 = vmax.f32 %v344_v22, 0.0  ;;  %v377_v34 = vmax.f32 %v345_v23, 0.0  ;;  %v5406_v35 = vadd.f32 %v5374_v6, %v310_v24  ;;  %v277_v37 = vld [vmem:[%s5369_s12 + $0x60] sm:$0xff]  ;;  %v278_v38 = vld [vmem:[%s5369_s12 + $0x68] sm:$0xff] }
  0x19   : > { %798 = vst.msk [vmem:[#allocation2 + $0xf0] sm:$0xff] %vm408_vm1, %v5235_v1  ;;  %799 = vst.msk [vmem:[#allocation2 + $0xf8] sm:$0xff] %vm408_vm1, %v5235_v1  ;;  %v378_v39 = vmax.f32 %v346_v25, 0.0  ;;  %v379_v40 = vmax.f32 %v347_v26, 0.0  ;;  %v380_v41 = vmax.f32 %v5399_v27, 0.0  ;;  %4446 = vmatprep.mubr.msk.f32.mxu0 %vm408_vm1, %v375_v32  ;;  %v312_v44 = vmul.f32 %v5362_v5, %v273_v29  ;;  %v279_v47 = vld [vmem:[%s5369_s12 + $0x70] sm:$0xff] }
  0x1a   : > { %801 = vst.msk [vmem:[#allocation2 + $0x108] sm:$0xff] %vm408_vm1, %v5235_v1  ;;  %802 = vst.msk [vmem:[#allocation2 + $0x110] sm:$0xff] %vm408_vm1, %v5235_v1  ;;  %v5413_v42 = vadd.f32 %v5374_v6, %v311_v28  ;;  %v381_v43 = vmax.f32 %v5406_v35, 0.0  ;;  %v313_v45 = vmul.f32 %v5362_v5, %v274_v30  ;;  %v314_v46 = vmul.f32 %v5362_v5, %v275_v31  ;;  %v5427_v48 = vld [vmem:[%s6897_s3] sm:$0xf]  ;;  %v280_v53 = vld [vmem:[%s5369_s12 + $0x78] sm:$0xff] }
  0x1b   : > { %804 = vst.msk [vmem:[#allocation2 + $0x120] sm:$0xff] %vm408_vm1, %v5235_v1  ;;  %805 = vst.msk [vmem:[#allocation2 + $0x128] sm:$0xff] %vm408_vm1, %v5235_v1  ;;  %4447 = vmatmul.mubr.msk.f32.vlgmr.msra.gmra.mrb[0].mxu0 %vm408_vm1, %v376_v33  ;;  %v315_v50 = vmul.f32 %v5362_v5, %v276_v36  ;;  %v316_v51 = vmul.f32 %v5362_v5, %v277_v37  ;;  %v317_v52 = vmul.f32 %v5362_v5, %v278_v38  ;;  %v281_v61 = vld [vmem:[%s5369_s12 + $0x80] sm:$0xff]  ;;  %v282_v62 = vld [vmem:[%s5369_s12 + $0x88] sm:$0xff] }
  0x1c   : > { %807 = vst.msk [vmem:[#allocation2 + $0x138] sm:$0xff] %vm408_vm1, %v5235_v1  ;;  %808 = vst.msk [vmem:[#allocation2 + $0x140] sm:$0xff] %vm408_vm1, %v5235_v1  ;;  %v382_v49 = vmax.f32 %v5413_v42, 0.0  ;;  %4449 = vmatprep.mubr.msk.f32.mxu0 %vm408_vm1, %v377_v34  ;;  %4495 = vmatpush3.msk.msra.mxu0 %vm505_vm0, %v5346_v3  ;;  %v5447_v54 = vadd.f32 %v5374_v6, %v312_v44  ;;  %v5450_v55 = vadd.f32 %v5374_v6, %v313_v45  ;;  %v283_v22 = vld [vmem:[%s5369_s12 + $0x90] sm:$0xff] }
  0x1d   : > { %810 = vst.msk [vmem:[#allocation2 + $0x150] sm:$0xff] %vm408_vm1, %v5235_v1  ;;  %811 = vst.msk [vmem:[#allocation2 + $0x158] sm:$0xff] %vm408_vm1, %v5235_v1  ;;  %v5453_v56 = vadd.f32 %v5374_v6, %v314_v46  ;;  %v5459_v57 = vadd.f32 %v5374_v6, %v315_v50  ;;  %v5462_v58 = vadd.f32 %v5374_v6, %v316_v51  ;;  %4544 = vmatprep.subr.msk.mxu0 %vm505_vm0, %v5427_v48  ;;  %v285_v50 = vld [vmem:[%s5369_s12 + $0xa0] sm:$0xff]  ;;  %v286_v51 = vld [vmem:[%s5369_s12 + $0xa8] sm:$0xff] }
  0x1e   : > { %813 = vst.msk [vmem:[#allocation2 + $0x168] sm:$0xff] %vm408_vm1, %v5235_v1  ;;  %814 = vst.msk [vmem:[#allocation2 + $0x170] sm:$0xff] %vm408_vm1, %v5235_v1  ;;  %v5465_v59 = vadd.f32 %v5374_v6, %v317_v52  ;;  %v318_v60 = vmul.f32 %v5362_v5, %v279_v47  ;;  %v383_v63 = vmax.f32 %v5447_v54, 0.0  ;;  %v384_v0 = vmax.f32 %v5450_v55, 0.0  ;;  %v288_v55 = vld [vmem:[%s5369_s12 + $0xb8] sm:$0xff] }
  0x1f   : > { %816 = vst.msk [vmem:[#allocation2 + $0x180] sm:$0xff] %vm408_vm1, %v5235_v1  ;;  %817 = vst.msk [vmem:[#allocation2 + $0x188] sm:$0xff] %vm408_vm1, %v5235_v1  ;;  %v319_v2 = vmul.f32 %v5362_v5, %v280_v53  ;;  %4450 = vmatmul.mubr.msk.f32.gmra.mrb[2].mxu0 %vm408_vm1, %v378_v39  ;;  %v386_v3 = vmax.f32 %v5459_v57, 0.0  ;;  %v387_v7 = vmax.f32 %v5462_v58, 0.0  ;;  %v320_v10 = vmul.f32 %v5362_v5, %v281_v61 }
  0x20   : > { %819 = vst.msk [vmem:[#allocation2 + $0x198] sm:$0xff] %vm408_vm1, %v5235_v1  ;;  %820 = vst.msk [vmem:[#allocation2 + $0x1a0] sm:$0xff] %vm408_vm1, %v5235_v1  ;;  %v388_v8 = vmax.f32 %v5465_v59, 0.0  ;;  %v5481_v9 = vadd.f32 %v5374_v6, %v318_v60  ;;  %4452 = vmatprep.mubr.msk.f32.mxu0 %vm408_vm1, %v379_v40  ;;  %v321_v11 = vmul.f32 %v5362_v5, %v282_v62 }
  0x21   : > { %773 = vst.msk [vmem:[#allocation2 + $0x28] sm:$0x3] %vm769_vm2, %v5235_v1  ;;  %770 = vst.msk [vmem:[#allocation2 + $0x10] sm:$0x3] %vm769_vm2, %v5235_v1  ;;  %v5519_v21 = vadd.f32 %v5374_v6, %v319_v2  ;;  %v5537_v29 = vadd.f32 %v5374_v6, %v320_v10  ;;  %v324_v54 = vmul.f32 %v5362_v5, %v285_v50 }
  0x22   : > { %776 = vst.msk [vmem:[#allocation2 + $0x40] sm:$0x3] %vm769_vm2, %v5235_v1  ;;  %779 = vst.msk [vmem:[#allocation2 + $0x58] sm:$0x3] %vm769_vm2, %v5235_v1  ;;  %v6908_v15 = vmax.f32 %v5481_v9, 0.0  ;;  %v5540_v27 = vadd.f32 %v5374_v6, %v321_v11  ;;  %v7025_v59 = vmax.f32 %v5481_v9, 0.0 }
  0x23   : > { %782 = vst.msk [vmem:[#allocation2 + $0x70] sm:$0x3] %vm769_vm2, %v5235_v1  ;;  %785 = vst.msk [vmem:[#allocation2 + $0x88] sm:$0x3] %vm769_vm2, %v5235_v1  ;;  %4453 = vmatmul.mubr.msk.f32.gmra.mrb[4].mxu0 %vm408_vm1, %v380_v41  ;;  %v6906_v47 = vmax.f32 %v5519_v21, 0.0  ;;  %v6905_v60 = vmax.f32 %v5537_v29, 0.0 }
  0x24   : > { %788 = vst.msk [vmem:[#allocation2 + $0xa0] sm:$0x3] %vm769_vm2, %v5235_v1  ;;  %791 = vst.msk [vmem:[#allocation2 + $0xb8] sm:$0x3] %vm769_vm2, %v5235_v1  ;;  %4455 = vmatprep.mubr.msk.f32.mxu0 %vm408_vm1, %v381_v43  ;;  %v6903_v61 = vmax.f32 %v5540_v27, 0.0 }
  0x25   : > { %794 = vst.msk [vmem:[#allocation2 + $0xd0] sm:$0x3] %vm769_vm2, %v5235_v1  ;;  %797 = vst.msk [vmem:[#allocation2 + $0xe8] sm:$0x3] %vm769_vm2, %v5235_v1 }
  0x26   : > { %800 = vst.msk [vmem:[#allocation2 + $0x100] sm:$0x3] %vm769_vm2, %v5235_v1  ;;  %803 = vst.msk [vmem:[#allocation2 + $0x118] sm:$0x3] %vm769_vm2, %v5235_v1 }
  0x27   : > { %806 = vst.msk [vmem:[#allocation2 + $0x130] sm:$0x3] %vm769_vm2, %v5235_v1  ;;  %809 = vst.msk [vmem:[#allocation2 + $0x148] sm:$0x3] %vm769_vm2, %v5235_v1  ;;  %4456 = vmatmul.mubr.msk.f32.gmra.mrb[6].mxu0 %vm408_vm1, %v382_v49 }
  0x28   : > { %812 = vst.msk [vmem:[#allocation2 + $0x160] sm:$0x3] %vm769_vm2, %v5235_v1  ;;  %815 = vst.msk [vmem:[#allocation2 + $0x178] sm:$0x3] %vm769_vm2, %v5235_v1  ;;  %4458 = vmatprep.mubr.msk.f32.mxu0 %vm408_vm1, %v383_v63 }
  0x29   : > { %818 = vst.msk [vmem:[#allocation2 + $0x190] sm:$0x3] %vm769_vm2, %v5235_v1  ;;  %821 = vst.msk [vmem:[#allocation2 + $0x1a8] sm:$0x3] %vm769_vm2, %v5235_v1  ;;  %v385_v1 = vmax.f32 %v5453_v56, 0.0 }
  0x2a   : > { %823 = vst.msk [vmem:[#allocation2 + $0x19] sm:$0xff] %vm408_vm1, %v375_v32  ;;  %824 = vst.msk [vmem:[#allocation2 + $0x21] sm:$0xff] %vm408_vm1, %v376_v33 }
  0x2b   : > { %825 = vst.msk [vmem:[#allocation2 + $0x31] sm:$0xff] %vm408_vm1, %v377_v34  ;;  %826 = vst.msk [vmem:[#allocation2 + $0x39] sm:$0xff] %vm408_vm1, %v378_v39  ;;  %4459 = vmatmul.mubr.msk.f32.gmra.mrb[8].mxu0 %vm408_vm1, %v384_v0 }
  0x2c   : > { %827 = vst.msk [vmem:[#allocation2 + $0x49] sm:$0xff] %vm408_vm1, %v379_v40  ;;  %828 = vst.msk [vmem:[#allocation2 + $0x51] sm:$0xff] %vm408_vm1, %v380_v41  ;;  %v322_v40 = vmul.f32 %v5362_v5, %v283_v22  ;;  %v284_v41 = vld [vmem:[%s5369_s12 + $0x98] sm:$0xff]  ;;  %4461 = vmatprep.mubr.msk.f32.mxu0 %vm408_vm1, %v385_v1 }
  0x2d   : > { %829 = vst.msk [vmem:[#allocation2 + $0x61] sm:$0xff] %vm408_vm1, %v381_v43  ;;  %830 = vst.msk [vmem:[#allocation2 + $0x69] sm:$0xff] %vm408_vm1, %v382_v49  ;;  %v5572_v43 = vld [vmem:[%s6897_s3 + $0x18] sm:$0xf]  ;;  %v323_v49 = vmul.f32 %v5362_v5, %v284_v41  ;;  %v290_v41 = vld [vmem:[%s5369_s12 + $0xc8] sm:$0xff] }
  0x2e   : > { %831 = vst.msk [vmem:[#allocation2 + $0x79] sm:$0xff] %vm408_vm1, %v383_v63  ;;  %832 = vst.msk [vmem:[#allocation2 + $0x81] sm:$0xff] %vm408_vm1, %v384_v0  ;;  %v325_v63 = vmul.f32 %v5362_v5, %v286_v51  ;;  %v5626_v11 = vadd.f32 %v5374_v6, %v322_v40  ;;  %v329_v57 = vmul.f32 %v5362_v5, %v290_v41 }
  0x2f   : > { %833 = vst.msk [vmem:[#allocation2 + $0x91] sm:$0xff] %vm408_vm1, %v385_v1  ;;  %834 = vst.msk [vmem:[#allocation2 + $0x99] sm:$0xff] %vm408_vm1, %v386_v3  ;;  %v5655_v40 = vadd.f32 %v5374_v6, %v323_v49  ;;  %v291_v1 = vld [vmem:[%s5369_s12 + $0xd0] sm:$0xff]  ;;  %4462 = vmatmul.mubr.msk.f32.gmra.mrb[10].mxu0 %vm408_vm1, %v386_v3 }
  0x30   : > { %835 = vst.msk [vmem:[#allocation2 + $0xa9] sm:$0xff] %vm408_vm1, %v387_v7  ;;  %836 = vst.msk [vmem:[#allocation2 + $0xb1] sm:$0xff] %vm408_vm1, %v388_v8  ;;  %v5663_v50 = vadd.f32 %v5374_v6, %v325_v63  ;;  %4464 = vmatprep.mubr.msk.f32.mxu0 %vm408_vm1, %v387_v7  ;;  %v330_v58 = vmul.f32 %v5362_v5, %v291_v1 }
  0x31   : > { %v5495_v12 = vld [vmem:[#allocation2 + $0x18] sm:$0xff]  ;;  %v5497_v13 = vld [vmem:[#allocation2 + $0x20] sm:$0xff]  ;;  %v5499_v14 = vld [vmem:[#allocation2 + $0x28] sm:$0x3]  ;;  %837 = vst.msk [vmem:[#allocation2 + $0xc1] sm:$0xff] %vm408_vm1, %v6908_v15 }
  0x32   : > { %v972_v16 = vrot.slane %v5495_v12, 1  ;;  %v973_v17 = vrot.slane %v5497_v13, 1  ;;  %v975_v18 = vrot.slane %v5499_v14, 1  ;;  %v5514_v19 = vld [vmem:[#allocation2 + $0x30] sm:$0xff]  ;;  %v5516_v20 = vld [vmem:[#allocation2 + $0x38] sm:$0xff]  ;;  %838 = vst.msk [vmem:[#allocation2 + $0xc9] sm:$0xff] %vm408_vm1, %v6906_v47 }
  0x33   : > { %v977_v23 = vrot.slane %v5514_v19, 1  ;;  %v978_v24 = vrot.slane %v5516_v20, 1  ;;  %v5527_v25 = vld [vmem:[#allocation2 + $0x40] sm:$0x3]  ;;  %v5529_v26 = vld [vmem:[#allocation2 + $0x48] sm:$0xff]  ;;  %v5531_v28 = vld [vmem:[#allocation2 + $0x50] sm:$0xff]  ;;  %4465 = vmatmul.mubr.msk.f32.gmra.mrb[12].mxu0 %vm408_vm1, %v388_v8 }
  0x34   : > { %v5543_v30 = vsel %vm966_vm3, %v972_v16, %v973_v17  ;;  %v5549_v31 = vsel %vm966_vm3, %v973_v17, %v975_v18  ;;  %v980_v32 = vrot.slane %v5527_v25, 1  ;;  %v982_v33 = vrot.slane %v5529_v26, 1  ;;  %v5553_v34 = vld [vmem:[#allocation2 + $0x58] sm:$0x3]  ;;  %v5555_v36 = vld [vmem:[#allocation2 + $0x60] sm:$0xff]  ;;  %v5557_v37 = vld [vmem:[#allocation2 + $0x68] sm:$0xff]  ;;  %4467 = vmatprep.mubr.msk.f32.mxu0 %vm408_vm1, %v7025_v59 }
  0x35   : > { %4696 = vmatprep.mubr.msk.f32.mxu1 %vm408_vm1, %v5543_v30  ;;  %v5562_v35 = vsel %vm966_vm3, %v977_v23, %v978_v24  ;;  %v983_v38 = vrot.slane %v5531_v28, 1  ;;  %v5565_v39 = vld [vmem:[#allocation2 + $0x70] sm:$0x3]  ;;  %v985_v45 = vrot.slane %v5553_v34, 1  ;;  %v987_v46 = vrot.slane %v5555_v36, 1  ;;  %v5601_v42 = vld [vmem:[#allocation2 + $0x78] sm:$0xff] }
  0x36   : > { %4697 = vmatmul.mubr.msk.f32.vlgmr.msra.gmra.mrb[0].mxu1 %vm408_vm1, %v5549_v31  ;;  %v5577_v44 = vsel %vm966_vm3, %v978_v24, %v980_v32  ;;  %v988_v52 = vrot.slane %v5557_v37, 1  ;;  %v990_v53 = vrot.slane %v5565_v39, 1  ;;  %v5607_v62 = vld [vmem:[#allocation2 + $0x80] sm:$0xff]  ;;  %v5609_v2 = vld [vmem:[#allocation2 + $0x88] sm:$0x3]  ;;  %839 = vst.msk [vmem:[#allocation2 + $0xd9] sm:$0xff] %vm408_vm1, %v6905_v60 }
  0x37   : > { %4745 = vmatpush3.msk.msra.mxu1 %vm505_vm0, %v5354_v4  ;;  %4699 = vmatprep.mubr.msk.f32.mxu1 %vm408_vm1, %v5562_v35  ;;  %v5599_v4 = vsel %vm966_vm3, %v982_v33, %v983_v38  ;;  %840 = vst.msk [vmem:[#allocation2 + $0xe1] sm:$0xff] %vm408_vm1, %v6903_v61  ;;  %v5623_v10 = vld [vmem:[#allocation2 + $0x90] sm:$0xff]  ;;  %v5635_v17 = vsel %vm966_vm3, %v983_v38, %v985_v45  ;;  %v992_v23 = vrot.slane %v5601_v42, 1  ;;  %v5644_v24 = vld [vmem:[#allocation2 + $0x98] sm:$0xff]  ;;  %v289_v32 = vld [vmem:[%s5369_s12 + $0xc0] sm:$0xff]  ;;  %v993_v0 = vrot.slane %v5607_v62, 1 }
  0x38   : > { %4794 = vmatprep.subr.msk.mxu1 %vm505_vm0, %v5572_v43  ;;  %v287_v16 = vld [vmem:[%s5369_s12 + $0xb0] sm:$0xff]  ;;  %v5638_v18 = vsel %vm966_vm3, %v987_v46, %v988_v52  ;;  %v5641_v22 = vsel %vm966_vm3, %v988_v52, %v990_v53  ;;  %v995_v33 = vrot.slane %v5609_v2, 1  ;;  %v6901_v38 = vmax.f32 %v5626_v11, 0.0  ;;  %v5683_v63 = vld [vmem:[#allocation2 + $0xa8] sm:$0xff]  ;;  %v296_v47 = vld [vmem:[%s5369_s12 + $0xf8] sm:$0xff] }
  0x39   : > { %7017 = vst [vmem:[#allocation3_spill] sm:$0xff] %v5641_v22  ;;  %v997_v45 = vrot.slane %v5623_v10, 1  ;;  %v5660_v46 = vadd.f32 %v5374_v6, %v324_v54  ;;  %v326_v56 = vmul.f32 %v5362_v5, %v287_v16  ;;  %v998_v51 = vrot.slane %v5644_v24, 1  ;;  %v5681_v54 = vld [vmem:[#allocation2 + $0xa0] sm:$0x3]  ;;  %7019 = vst [vmem:[#allocation5_spill] sm:$0xff] %v5683_v63 }
  0x3a   : > { %4700 = vmatmul.mubr.msk.f32.gmra.mrb[2].mxu1 %vm408_vm1, %v5577_v44  ;;  %841 = vst.msk [vmem:[#allocation2 + $0xf1] sm:$0xff] %vm408_vm1, %v6901_v38  ;;  %v6902_v52 = vmax.f32 %v5655_v40, 0.0  ;;  %v327_v53 = vmul.f32 %v5362_v5, %v288_v55  ;;  %v328_v49 = vmul.f32 %v5362_v5, %v289_v32  ;;  %7018 = vst [vmem:[#allocation4_spill] sm:$0xff] %v5681_v54  ;;  %v6907_v55 = vmax.f32 %v5663_v50, 0.0  ;;  %v5697_v38 = vld [vmem:[#allocation2 + $0xb0] sm:$0xff]  ;;  %v294_v61 = vld [vmem:[%s5369_s12 + $0xe8] sm:$0xff] }
  0x3b   : > { %4702 = vmatprep.mubr.msk.f32.mxu1 %vm408_vm1, %v5599_v4  ;;  %v6904_v16 = vmax.f32 %v5660_v46, 0.0  ;;  %v5688_v32 = vadd.f32 %v5374_v6, %v326_v56  ;;  %v5695_v3 = vsel %vm966_vm3, %v992_v23, %v993_v0  ;;  %7021 = vst [vmem:[#allocation7_spill] sm:$0xff] %v5697_v38  ;;  %v292_v23 = vld [vmem:[%s5369_s12 + $0xd8] sm:$0xff]  ;;  %v1002_v1 = vrot.slane %v5683_v63, 1  ;;  %v295_v60 = vld [vmem:[%s5369_s12 + $0xf0] sm:$0xff]  ;;  %v5762_v59 = vld [vmem:[#allocation2 + $0xc0] sm:$0xff] }
  0x3c   : > { %7020 = vst [vmem:[#allocation6_spill] sm:$0xff] %v5695_v3  ;;  %842 = vst.msk [vmem:[#allocation2 + $0xf9] sm:$0xff] %vm408_vm1, %v6902_v52  ;;  %v5703_v56 = vadd.f32 %v5374_v6, %v327_v53  ;;  %v5706_v41 = vadd.f32 %v5374_v6, %v328_v49  ;;  %v293_v52 = vld [vmem:[%s5369_s12 + $0xe0] sm:$0xff]  ;;  %v1000_v53 = vrot.slane %v5681_v54, 1  ;;  %v5736_v15 = vsel %vm966_vm3, %v997_v45, %v998_v51  ;;  %v5748_v8 = vld [vmem:[#allocation2 + $0xb8] sm:$0x3] }
  0x3d   : > { %843 = vst.msk [vmem:[#allocation2 + $0x109] sm:$0xff] %vm408_vm1, %v6904_v16  ;;  %844 = vst.msk [vmem:[#allocation2 + $0x111] sm:$0xff] %vm408_vm1, %v6907_v55  ;;  %v5733_v55 = vsel %vm966_vm3, %v993_v0, %v995_v33  ;;  %v1003_v7 = vrot.slane %v5697_v38, 1  ;;  %v7024_v49 = vmax.f32 %v5688_v32, 0.0  ;;  %v5743_v16 = vadd.f32 %v5374_v6, %v329_v57  ;;  %v5764_v38 = vld [vmem:[#allocation2 + $0xc8] sm:$0xff] }
  0x3e   : > { %4703 = vmatmul.mubr.msk.f32.gmra.mrb[4].mxu1 %vm408_vm1, %v5635_v17  ;;  %7022 = vst [vmem:[#allocation8_spill] sm:$0xff] %v5733_v55  ;;  %7023 = vst [vmem:[#allocation9_spill] sm:$0xff] %v5736_v15  ;;  %v7026_v0 = vmax.f32 %v5703_v56, 0.0  ;;  %v7027_v33 = vmax.f32 %v5706_v41, 0.0  ;;  %v5757_v45 = vadd.f32 %v5374_v6, %v330_v58  ;;  %v331_v57 = vmul.f32 %v5362_v5, %v292_v23 }
  0x3f   : > { %4705 = vmatprep.mubr.msk.f32.mxu1 %vm408_vm1, %v5638_v18  ;;  %845 = vst.msk [vmem:[#allocation2 + $0x121] sm:$0xff] %vm408_vm1, %v7024_v49  ;;  %v332_v49 = vmul.f32 %v5362_v5, %v293_v52  ;;  %v333_v9 = vmul.f32 %v5362_v5, %v294_v61  ;;  %7028 = vst [vmem:[#allocation10_spill] sm:$0xff] %v5764_v38  ;;  %v6914_v63 = vmax.f32 %v5743_v16, 0.0  ;;  %v7029_v52 = vmax.f32 %v5519_v21, 0.0 }
  0x40   : > { %846 = vst.msk [vmem:[#allocation2 + $0x129] sm:$0xff] %vm408_vm1, %v7026_v0  ;;  %847 = vst.msk [vmem:[#allocation2 + $0x139] sm:$0xff] %vm408_vm1, %v7027_v33  ;;  %v334_v0 = vmul.f32 %v5362_v5, %v295_v60  ;;  %v335_v54 = vmul.f32 %v5362_v5, %v296_v47  ;;  %v6915_v58 = vmax.f32 %v5757_v45, 0.0  ;;  %v5773_v23 = vadd.f32 %v5374_v6, %v331_v57 }
  0x41   : > { %v5776_v61 = vadd.f32 %v5374_v6, %v332_v49  ;;  %4468 = vmatmul.mubr.msk.f32.gmra.mrb[14].mxu0 %vm408_vm1, %v7029_v52  ;;  %v5784_v5 = vsel %vm966_vm3, %v998_v51, %v1000_v53  ;;  %v1005_v47 = vrot.slane %v5748_v8, 1  ;;  %848 = vst.msk [vmem:[#allocation2 + $0x141] sm:$0xff] %vm408_vm1, %v6914_v63  ;;  %v5791_v60 = vadd.f32 %v5374_v6, %v333_v9  ;;  %v5804_v49 = vld [vmem:[#allocation2 + $0xd0] sm:$0x3] }
  0x42   : > { %4706 = vmatmul.mubr.msk.f32.gmra.mrb[6].mxu1 %vm408_vm1, %v5641_v22  ;;  %7030 = vst [vmem:[#allocation11_spill] sm:$0xff] %v5784_v5  ;;  %v5794_v33 = vadd.f32 %v5374_v6, %v334_v0  ;;  %v7031_v21 = vmax.f32 %v5537_v29, 0.0  ;;  %v5800_v57 = vsel %vm966_vm3, %v1002_v1, %v1003_v7  ;;  %v1007_v51 = vrot.slane %v5762_v59, 1  ;;  %7033 = vst [vmem:[#allocation13_spill] sm:$0xff] %v5804_v49  ;;  %v5812_v0 = vld [vmem:[#allocation2 + $0xd8] sm:$0xff]  ;;  %v5814_v29 = vld [vmem:[#allocation2 + $0xe0] sm:$0xff] }
  0x43   : > { %4708 = vmatprep.mubr.msk.f32.mxu1 %vm408_vm1, %v5695_v3  ;;  %7032 = vst [vmem:[#allocation12_spill] sm:$0xff] %v5800_v57  ;;  %v1008_v53 = vrot.slane %v5764_v38, 1  ;;  %849 = vst.msk [vmem:[#allocation2 + $0x151] sm:$0xff] %vm408_vm1, %v6915_v58  ;;  %v5810_v9 = vadd.f32 %v5374_v6, %v335_v54  ;;  %v6916_v1 = vmax.f32 %v5773_v23, 0.0  ;;  %v6917_v52 = vmax.f32 %v5776_v61, 0.0 }
  0x44   : > { %4470 = vmatprep.mubr.msk.f32.mxu0 %vm408_vm1, %v7031_v21  ;;  %7034 = vst [vmem:[#allocation14_spill] sm:$0xff] %v5812_v0  ;;  %7035 = vst [vmem:[#allocation15_spill] sm:$0xff] %v5814_v29  ;;  %v7036_v63 = vmax.f32 %v5540_v27, 0.0  ;;  %v5827_v6 = vsel %vm966_vm3, %v1003_v7, %v1005_v47  ;;  %v1010_v54 = vrot.slane %v5804_v49, 1  ;;  %v6920_v58 = vmax.f32 %v5794_v33, 0.0  ;;  %v5882_v49 = vld [vmem:[#allocation2 + $0x108] sm:$0xff] }
  0x45   : > { %7037 = vst [vmem:[#allocation16_spill] sm:$0xff] %v5827_v6  ;;  %850 = vst.msk [vmem:[#allocation2 + $0x159] sm:$0xff] %vm408_vm1, %v6916_v1  ;;  %v7038_v21 = vmax.f32 %v5626_v11, 0.0  ;;  %v5838_v27 = vsel %vm966_vm3, %v1007_v51, %v1008_v53  ;;  %v1013_v7 = vrot.slane %v5814_v29, 1  ;;  %v5842_v47 = vld [vmem:[#allocation2 + $0xe8] sm:$0x3] }
  0x46   : > { %4709 = vmatmul.mubr.msk.f32.gmra.mrb[8].mxu1 %vm408_vm1, %v5733_v55  ;;  %4471 = vmatmul.mubr.msk.f32.gmra.mrb[16].mxu0 %vm408_vm1, %v7036_v63  ;;  %7039 = vst [vmem:[#allocation17_spill] sm:$0xff] %v5838_v27  ;;  %v1012_v63 = vrot.slane %v5812_v0, 1  ;;  %7040 = vst [vmem:[#allocation18_spill] sm:$0xff] %v5842_v47  ;;  %v7041_v1 = vmax.f32 %v5791_v60, 0.0  ;;  %v6923_v11 = vmax.f32 %v5810_v9, 0.0  ;;  %v5853_v51 = vld [vmem:[#allocation2 + $0xf8] sm:$0xff] }
  0x47   : > { %4711 = vmatprep.mubr.msk.f32.mxu1 %vm408_vm1, %v5736_v15  ;;  %4473 = vmatprep.mubr.msk.f32.mxu0 %vm408_vm1, %v7038_v21  ;;  %851 = vst.msk [vmem:[#allocation2 + $0x169] sm:$0xff] %vm408_vm1, %v6917_v52  ;;  %v5851_v21 = vld [vmem:[#allocation2 + $0xf0] sm:$0xff]  ;;  %7043 = vst [vmem:[#allocation20_spill] sm:$0xff] %v5853_v51  ;;  %v7044_v52 = vmax.f32 %v5655_v40, 0.0  ;;  %v1015_v29 = vrot.slane %v5842_v47, 1  ;;  %v1018_v40 = vrot.slane %v5853_v51, 1 }
  0x48   : > { %852 = vst.msk [vmem:[#allocation2 + $0x171] sm:$0xff] %vm408_vm1, %v7041_v1  ;;  %7042 = vst [vmem:[#allocation19_spill] sm:$0xff] %v5851_v21  ;;  %v5869_v1 = vsel %vm966_vm3, %v1008_v53, %v1010_v54  ;;  %v5876_v0 = vsel %vm966_vm3, %v1012_v63, %v1013_v7  ;;  %v5884_v38 = vld [vmem:[#allocation2 + $0x110] sm:$0xff]  ;;  %v7053_v54 = vmax.f32 %v5688_v32, 0.0  ;;  %v1022_v51 = vrot.slane %v5882_v49, 1  ;;  %v5909_v47 = vld [vmem:[#allocation2 + $0x128] sm:$0xff] }
  0x49   : > { %853 = vst.msk [vmem:[#allocation2 + $0x181] sm:$0xff] %vm408_vm1, %v6920_v58  ;;  %854 = vst.msk [vmem:[#allocation2 + $0x189] sm:$0xff] %vm408_vm1, %v6923_v11  ;;  %v7046_v58 = vmax.f32 %v5660_v46, 0.0  ;;  %v1017_v11 = vrot.slane %v5851_v21, 1  ;;  %v7051_v46 = vmax.f32 %v5663_v50, 0.0  ;;  %v1023_v50 = vrot.slane %v5884_v38, 1 }
  0x4a   : > { %4712 = vmatmul.mubr.msk.f32.gmra.mrb[10].mxu1 %vm408_vm1, %v5784_v5  ;;  %4474 = vmatmul.mubr.msk.f32.gmra.mrb[18].mxu0 %vm408_vm1, %v7044_v52  ;;  %7045 = vst [vmem:[#allocation21_spill] sm:$0xff] %v5869_v1  ;;  %7047 = vst [vmem:[#allocation22_spill] sm:$0xff] %v5876_v0  ;;  %v5880_v52 = vld [vmem:[#allocation2 + $0x100] sm:$0x3]  ;;  %v7058_v32 = vmax.f32 %v5703_v56, 0.0  ;;  %v1028_v56 = vrot.slane %v5909_v47, 1 }
  0x4b   : > { %4714 = vmatprep.mubr.msk.f32.mxu1 %vm408_vm1, %v5800_v57  ;;  %4476 = vmatprep.mubr.msk.f32.mxu0 %vm408_vm1, %v7046_v58  ;;  %7048 = vst [vmem:[#allocation23_spill] sm:$0xff] %v5880_v52  ;;  %7049 = vst [vmem:[#allocation24_spill] sm:$0xff] %v5882_v49  ;;  %v5894_v58 = vsel %vm966_vm3, %v1013_v7, %v1015_v29  ;;  %v1020_v53 = vrot.slane %v5880_v52, 1  ;;  %v5901_v63 = vsel %vm966_vm3, %v1017_v11, %v1018_v40  ;;  %v5907_v21 = vld [vmem:[#allocation2 + $0x120] sm:$0xff]  ;;  %v5932_v49 = vld [vmem:[#allocation2 + $0x138] sm:$0xff] }
  0x4c   : > { %7050 = vst [vmem:[#allocation25_spill] sm:$0xff] %v5884_v38  ;;  %7052 = vst [vmem:[#allocation26_spill] sm:$0xff] %v5894_v58  ;;  %v7060_v11 = vmax.f32 %v5706_v41, 0.0  ;;  %v1027_v38 = vrot.slane %v5907_v21, 1  ;;  %v5934_v52 = vld [vmem:[#allocation2 + $0x140] sm:$0xff]  ;;  %v7065_v41 = vmax.f32 %v5743_v16, 0.0 }
  0x4d   : > { %7054 = vst [vmem:[#allocation27_spill] sm:$0xff] %v5901_v63  ;;  %7056 = vst [vmem:[#allocation29_spill] sm:$0xff] %v5907_v21  ;;  %v5919_v29 = vsel %vm966_vm3, %v1018_v40, %v1020_v53  ;;  %v7067_v53 = vmax.f32 %v5757_v45, 0.0  ;;  %v1033_v16 = vrot.slane %v5934_v52, 1  ;;  %v5957_v21 = vld [vmem:[#allocation2 + $0x150] sm:$0xff]  ;;  %v5965_v45 = vld [vmem:[#allocation2 + $0x8] sm:$0xff] }
  0x4e   : > { %4715 = vmatmul.mubr.msk.f32.gmra.mrb[12].mxu1 %vm408_vm1, %v5827_v6  ;;  %4477 = vmatmul.mubr.msk.f32.gmra.mrb[20].mxu0 %vm408_vm1, %v7051_v46  ;;  %v5905_v46 = vld [vmem:[#allocation2 + $0x118] sm:$0x3]  ;;  %7057 = vst [vmem:[#allocation30_spill] sm:$0xff] %v5909_v47  ;;  %7059 = vst [vmem:[#allocation31_spill] sm:$0xff] %v5919_v29  ;;  %v1032_v47 = vrot.slane %v5932_v49, 1 }
  0x4f   : > { %4717 = vmatprep.mubr.msk.f32.mxu1 %vm408_vm1, %v5838_v27  ;;  %4479 = vmatprep.mubr.msk.f32.mxu0 %vm408_vm1, %v7053_v54  ;;  %7055 = vst [vmem:[#allocation28_spill] sm:$0xff] %v5905_v46  ;;  %v1025_v7 = vrot.slane %v5905_v46, 1  ;;  %v5926_v54 = vsel %vm966_vm3, %v1022_v51, %v1023_v50  ;;  %7063 = vst [vmem:[#allocation34_spill] sm:$0xff] %v5932_v49  ;;  %v5959_v46 = vld [vmem:[#allocation2 + $0x158] sm:$0xff] }
  0x50   : > { %7061 = vst [vmem:[#allocation32_spill] sm:$0xff] %v5926_v54  ;;  %7064 = vst [vmem:[#allocation35_spill] sm:$0xff] %v5934_v52  ;;  %v7076_v52 = vmax.f32 %v5776_v61, 0.0  ;;  %v5980_v49 = vsel %vm966_vm3, %v1032_v47, %v1033_v16  ;;  %v5992_v61 = vld [vmem:[#allocation2 + $0x170] sm:$0xff]  ;;  %v7081_v47 = vmax.f32 %v5791_v60, 0.0 }
  0x51   : > { %v5944_v51 = vsel %vm966_vm3, %v1023_v50, %v1025_v7  ;;  %7070 = vst [vmem:[#allocation39_spill] sm:$0xff] %v5957_v21  ;;  %7071 = vst [vmem:[#allocation40_spill] sm:$0xff] %v5959_v46  ;;  %v5963_v50 = vld [vmem:[#allocation2] sm:$0xff] }
  0x52   : > { %4718 = vmatmul.mubr.msk.f32.gmra.mrb[14].mxu1 %vm408_vm1, %v5869_v1  ;;  %4480 = vmatmul.mubr.msk.f32.gmra.mrb[22].mxu0 %vm408_vm1, %v7058_v32  ;;  %v5930_v32 = vld [vmem:[#allocation2 + $0x130] sm:$0x3]  ;;  %7066 = vst [vmem:[#allocation36_spill] sm:$0xff] %v5944_v51  ;;  %7072 = vst [vmem:[#allocation41_spill] sm:$0xff] %v5963_v50 }
  0x53   : > { %4720 = vmatprep.mubr.msk.f32.mxu1 %vm408_vm1, %v5876_v0  ;;  %4482 = vmatprep.mubr.msk.f32.mxu0 %vm408_vm1, %v7060_v11  ;;  %7062 = vst [vmem:[#allocation33_spill] sm:$0xff] %v5930_v32  ;;  %v1030_v40 = vrot.slane %v5930_v32, 1  ;;  %v5951_v11 = vsel %vm966_vm3, %v1027_v38, %v1028_v56  ;;  %7073 = vst [vmem:[#allocation42_spill] sm:$0xff] %v5965_v45  ;;  %v7074_v38 = vmax.f32 %v5773_v23, 0.0  ;;  %v1037_v32 = vrot.slane %v5957_v21, 1 }
  0x54   : > { %7068 = vst [vmem:[#allocation37_spill] sm:$0xff] %v5951_v11  ;;  %7077 = vst [vmem:[#allocation44_spill] sm:$0xff] %v5980_v49  ;;  %v1038_v23 = vrot.slane %v5959_v46, 1 }
  0x55   : > { %v5973_v7 = vsel %vm966_vm3, %v1028_v56, %v1030_v40  ;;  %v968_v56 = vrot.slane %v5965_v45, 1  ;;  %v5988_v40 = vld [vmem:[#allocation2 + $0x10] sm:$0x3]  ;;  %7080 = vst [vmem:[#allocation47_spill] sm:$0xff] %v5992_v61 }
  0x56   : > { %4721 = vmatmul.mubr.msk.f32.gmra.mrb[16].mxu1 %vm408_vm1, %v5894_v58  ;;  %4483 = vmatmul.mubr.msk.f32.gmra.mrb[24].mxu0 %vm408_vm1, %v7065_v41  ;;  %v5955_v41 = vld [vmem:[#allocation2 + $0x148] sm:$0x3]  ;;  %7075 = vst [vmem:[#allocation43_spill] sm:$0xff] %v5973_v7  ;;  %7079 = vst [vmem:[#allocation46_spill] sm:$0xff] %v5988_v40  ;;  %v6009_v46 = vsel %vm966_vm3, %v1037_v32, %v1038_v23  ;;  %v970_v21 = vrot.slane %v5988_v40, 1 }
  0x57   : > { %4723 = vmatprep.mubr.msk.f32.mxu1 %vm408_vm1, %v5901_v63  ;;  %4485 = vmatprep.mubr.msk.f32.mxu0 %vm408_vm1, %v7067_v53  ;;  %7069 = vst [vmem:[#allocation38_spill] sm:$0xff] %v5955_v41  ;;  %v1035_v53 = vrot.slane %v5955_v41, 1  ;;  %v5990_v41 = vld [vmem:[#allocation2 + $0x168] sm:$0xff]  ;;  %7084 = vst [vmem:[#allocation49_spill] sm:$0xff] %v6009_v46 }
  0x58   : > { %v1042_v60 = vrot.slane %v5990_v41, 1 }
  0x5a   : > { %4724 = vmatmul.mubr.msk.f32.gmra.mrb[18].mxu1 %vm408_vm1, %v5919_v29  ;;  %4486 = vmatmul.mubr.msk.f32.gmra.mrb[26].mxu0 %vm408_vm1, %v7074_v38  ;;  %v5984_v38 = vld [vmem:[#allocation2 + $0x160] sm:$0x3] }
  0x5b   : > { %4726 = vmatprep.mubr.msk.f32.mxu1 %vm408_vm1, %v5926_v54  ;;  %4488 = vmatprep.mubr.msk.f32.mxu0 %vm408_vm1, %v7076_v52  ;;  %7078 = vst [vmem:[#allocation45_spill] sm:$0xff] %v5984_v38  ;;  %v6002_v52 = vsel %vm966_vm3, %v1033_v16, %v1035_v53  ;;  %v1040_v45 = vrot.slane %v5984_v38, 1  ;;  %v6017_v53 = vld [vmem:[#allocation2 + $0x180] sm:$0xff]  ;;  %v6019_v38 = vld [vmem:[#allocation2 + $0x188] sm:$0xff] }
  0x5c   : > { %7082 = vst [vmem:[#allocation48_spill] sm:$0xff] %v6002_v52 }
  0x5d   : > { %v6029_v32 = vsel %vm966_vm3, %v1038_v23, %v1040_v45  ;;  %v6046_v45 = vld [vmem:[%s6897_s3 + $0x8] sm:$0xf] }
  0x5e   : > { %4727 = vmatmul.mubr.msk.f32.gmra.mrb[20].mxu1 %vm408_vm1, %v5944_v51  ;;  %4489 = vmatmul.mubr.msk.f32.gmra.mrb[28].mxu0 %vm408_vm1, %v7081_v47  ;;  %v1043_v47 = vrot.slane %v5992_v61, 1  ;;  %7086 = vst [vmem:[#allocation50_spill] sm:$0xff] %v6029_v32  ;;  %v2303_v61 = vrot.slane %v6017_v53, 1 }
  0x5f   : > { %4729 = vmatprep.mubr.msk.f32.mxu1 %vm408_vm1, %v5951_v11  ;;  %v967_v11 = vrot.slane %v5963_v50, 1  ;;  %v7083_v50 = vmax.f32 %v5794_v33, 0.0  ;;  %v7085_v33 = vmax.f32 %v5810_v9, 0.0  ;;  %v2304_v9 = vrot.slane %v6019_v38, 1 }
  0x60   : > { %v6035_v40 = vsel %vm966_vm3, %v1042_v60, %v1043_v47  ;;  %v1637_v60 = vrot.slane %v5495_v12, 2 }
  0x61   : > { %4491 = vmatprep.mubr.msk.f32.mxu0 %vm408_vm1, %v7083_v50  ;;  %v969_v16 = vsel %vm966_vm3, %v967_v11, %v968_v56  ;;  %v971_v11 = vsel %vm966_vm3, %v968_v56, %v970_v21  ;;  %7087 = vst [vmem:[#allocation51_spill] sm:$0xff] %v6035_v40  ;;  %v6058_v56 = vsel %vm966_vm3, %v2303_v61, %v2304_v9  ;;  %v1642_v61 = vrot.slane %v5514_v19, 2 }
  0x62   : > { %4730 = vmatmul.mubr.msk.f32.gmra.mrb[22].mxu1 %vm408_vm1, %v5973_v7  ;;  %v6014_v7 = vld [vmem:[#allocation2 + $0x178] sm:$0x3]  ;;  %4492 = vmatmul.mubr.msk.f32.gmra.mrb[30].mxu0 %vm408_vm1, %v7085_v33  ;;  %v6039_v33 = vld [vmem:[#allocation2 + $0x190] sm:$0x3]  ;;  %7089 = vst [vmem:[#allocation53_spill] sm:$0xff] %v6058_v56 }
  0x63   : > { %4732 = vmatprep.mubr.msk.f32.mxu1 %vm408_vm1, %v5980_v49  ;;  %v1045_v50 = vrot.slane %v6014_v7, 1  ;;  %4496 = vmatprep.mubr.msk.f32.mxu0 %vm408_vm1, %v969_v16  ;;  %v2306_v23 = vrot.slane %v6039_v33, 1  ;;  %v1638_v16 = vrot.slane %v5497_v13, 2 }
  0x65   : > { %v6052_v21 = vsel %vm966_vm3, %v1043_v47, %v1045_v50  ;;  %v1640_v47 = vrot.slane %v5499_v14, 2  ;;  %v1643_v50 = vrot.slane %v5516_v20, 2 }
  0x66   : > { %4733 = vmatmul.mubr.msk.f32.gmra.mrb[24].mxu1 %vm408_vm1, %v6002_v52  ;;  %4497 = vmatmul.mubr.msk.f32.vlgmr.msra.gmra.mrb[32].mxu0 %vm408_vm1, %v971_v11  ;;  %7088 = vst [vmem:[#allocation52_spill] sm:$0xff] %v6052_v21  ;;  %v1647_v11 = vrot.slane %v5529_v26, 2 }
  0x67   : > { %4735 = vmatprep.mubr.msk.f32.mxu1 %vm408_vm1, %v6009_v46  ;;  %4499 = vmatprep.mubr.msk.f32.mxu0 %vm408_vm1, %v5543_v30  ;;  %v6074_v30 = vsel %vm966_vm3, %v2304_v9, %v2306_v23  ;;  %v6090_v14 = vsel %vm1631_vm4, %v1638_v16, %v1640_v47  ;;  %v1648_v9 = vrot.slane %v5531_v28, 2  ;;  %v6098_v23 = vsel %vm1631_vm4, %v1642_v61, %v1643_v50 }
  0x68   : > { %4545 = vmatpush3.msk.msra.mxu0 %vm505_vm0, %v5427_v48  ;;  %7090 = vst [vmem:[#allocation54_spill] sm:$0xff] %v6074_v30  ;;  %v6079_v48 = vsel %vm1631_vm4, %v1637_v60, %v1638_v16  ;;  %v6105_v60 = vld [vmem:[%s6897_s3 + $0x1c] sm:$0xf]  ;;  %v1650_v16 = vrot.slane %v5553_v34, 2  ;;  %v1652_v61 = vrot.slane %v5555_v36, 2 }
  0x69   : > { %4594 = vmatprep.subr.msk.mxu0 %vm505_vm0, %v6046_v45  ;;  %v6120_v47 = vsel %vm1631_vm4, %v1647_v11, %v1648_v9  ;;  %v1657_v11 = vrot.slane %v5601_v42, 2 }
  0x6a   : > { %4736 = vmatmul.mubr.msk.f32.gmra.mrb[26].mxu1 %vm408_vm1, %v6029_v32  ;;  %4500 = vmatmul.mubr.msk.f32.gmra.mrb[34].mxu0 %vm408_vm1, %v5549_v31  ;;  %v1645_v31 = vrot.slane %v5527_v25, 2  ;;  %v6133_v34 = vsel %vm1631_vm4, %v1648_v9, %v1650_v16  ;;  %v1660_v9 = vrot.slane %v5609_v2, 2 }
  0x6b   : > { %4738 = vmatprep.mubr.msk.f32.mxu1 %vm408_vm1, %v6035_v40  ;;  %4502 = vmatprep.mubr.msk.f32.mxu0 %vm408_vm1, %v5562_v35 }
  0x6c   : > { %v6112_v25 = vsel %vm1631_vm4, %v1643_v50, %v1645_v31  ;;  %v1655_v50 = vrot.slane %v5565_v39, 2 }
  0x6e   : > { %4739 = vmatmul.mubr.msk.f32.gmra.mrb[28].mxu1 %vm408_vm1, %v6052_v21  ;;  %4503 = vmatmul.mubr.msk.f32.gmra.mrb[36].mxu0 %vm408_vm1, %v5577_v44 }
  0x6f   : > { %4741 = vmatprep.mubr.msk.f32.mxu1 %vm408_vm1, %v6058_v56  ;;  %4505 = vmatprep.mubr.msk.f32.mxu0 %vm408_vm1, %v5599_v4  ;;  %v1663_v56 = vrot.slane %v5644_v24, 2 }
  0x72   : > { %4742 = vmatmul.mubr.msk.f32.gmra.mrb[30].mxu1 %vm408_vm1, %v6074_v30  ;;  %4506 = vmatmul.mubr.msk.f32.gmra.mrb[38].mxu0 %vm408_vm1, %v5635_v17  ;;  %v1658_v30 = vrot.slane %v5607_v62, 2 }
  0x73   : > { %4746 = vmatprep.mubr.msk.f32.mxu1 %vm408_vm1, %v6079_v48  ;;  %4508 = vmatprep.mubr.msk.f32.mxu0 %vm408_vm1, %v5638_v18 }
  0x74   : > { %v6156_v16 = vsel %vm1631_vm4, %v1657_v11, %v1658_v30  ;;  %v6167_v2 = vsel %vm1631_vm4, %v1658_v30, %v1660_v9  ;;  %v1670_v9 = vrot.slane %v5748_v8, 2 }
  0x75   : > { %7091 = vst [vmem:[#allocation55_spill] sm:$0xff] %v6156_v16  ;;  %7092 = vst [vmem:[#allocation56_spill] sm:$0xff] %v6167_v2 }
  0x76   : > { %4747 = vmatmul.mubr.msk.f32.vlgmr.msra.gmra.mrb[0].mxu1 %vm408_vm1, %v6090_v14  ;;  %4509 = vmatmul.mubr.msk.f32.gmra.mrb[40].mxu0 %vm408_vm1, %v5641_v22 }
  0x77   : > { %4795 = vmatpush3.msk.msra.mxu1 %vm505_vm0, %v5572_v43  ;;  %4749 = vmatprep.mubr.msk.f32.mxu1 %vm408_vm1, %v6098_v23  ;;  %v1653_v43 = vrot.slane %v5557_v37, 2 }
  0x78   : > { %4844 = vmatprep.subr.msk.mxu1 %vm505_vm0, %v6105_v60  ;;  %4511 = vmatprep.mubr.msk.f32.mxu0 %vm408_vm1, %v5695_v3  ;;  %v7096_v3 = vld [vmem:[#allocation7_spill] sm:$0xff] }
  0x79   : > { %v6139_v31 = vsel %vm1631_vm4, %v1652_v61, %v1653_v43  ;;  %v6150_v39 = vsel %vm1631_vm4, %v1653_v43, %v1655_v50  ;;  %v1662_v61 = vrot.slane %v5623_v10, 2  ;;  %v7093_v43 = vld [vmem:[#allocation4_spill] sm:$0xff]  ;;  %v1668_v22 = vrot.slane %v7096_v3, 2 }
  0x7a   : > { %4750 = vmatmul.mubr.msk.f32.gmra.mrb[2].mxu1 %vm408_vm1, %v6112_v25  ;;  %4512 = vmatmul.mubr.msk.f32.gmra.mrb[42].mxu0 %vm408_vm1, %v5733_v55  ;;  %v1665_v50 = vrot.slane %v7093_v43, 2  ;;  %v1672_v43 = vrot.slane %v5762_v59, 2 }
  0x7b   : > { %4752 = vmatprep.mubr.msk.f32.mxu1 %vm408_vm1, %v6120_v47  ;;  %4514 = vmatprep.mubr.msk.f32.mxu0 %vm408_vm1, %v5736_v15  ;;  %v6173_v11 = vsel %vm1631_vm4, %v1662_v61, %v1663_v56  ;;  %v7095_v15 = vld [vmem:[#allocation5_spill] sm:$0xff]  ;;  %v6201_v8 = vsel %vm1631_vm4, %v1668_v22, %v1670_v9  ;;  %v7106_v9 = vld [vmem:[#allocation18_spill] sm:$0xff] }
  0x7c   : > { %7094 = vst [vmem:[#allocation4_spill] sm:$0xff] %v6173_v11  ;;  %v1667_v55 = vrot.slane %v7095_v15, 2  ;;  %v6184_v30 = vsel %vm1631_vm4, %v1663_v56, %v1665_v50  ;;  %v7101_v56 = vld [vmem:[#allocation13_spill] sm:$0xff] }
  0x7d   : > { %7097 = vst [vmem:[#allocation5_spill] sm:$0xff] %v6184_v30  ;;  %v1675_v50 = vrot.slane %v7101_v56, 2  ;;  %v1680_v56 = vrot.slane %v7106_v9, 2 }
  0x7e   : > { %4753 = vmatmul.mubr.msk.f32.gmra.mrb[4].mxu1 %vm408_vm1, %v6133_v34  ;;  %4515 = vmatmul.mubr.msk.f32.gmra.mrb[44].mxu0 %vm408_vm1, %v5784_v5  ;;  %v6190_v61 = vsel %vm1631_vm4, %v1667_v55, %v1668_v22 }
  0x7f   : > { %4755 = vmatprep.mubr.msk.f32.mxu1 %vm408_vm1, %v6139_v31  ;;  %4517 = vmatprep.mubr.msk.f32.mxu0 %vm408_vm1, %v5800_v57  ;;  %7098 = vst [vmem:[#allocation7_spill] sm:$0xff] %v6190_v61  ;;  %v7099_v57 = vld [vmem:[#allocation10_spill] sm:$0xff] }
  0x80   : > { %v1673_v5 = vrot.slane %v7099_v57, 2  ;;  %7100 = vst [vmem:[#allocation10_spill] sm:$0xff] %v6201_v8 }
  0x82   : > { %4756 = vmatmul.mubr.msk.f32.gmra.mrb[6].mxu1 %vm408_vm1, %v6150_v39  ;;  %4518 = vmatmul.mubr.msk.f32.gmra.mrb[46].mxu0 %vm408_vm1, %v5827_v6  ;;  %v6207_v55 = vsel %vm1631_vm4, %v1672_v43, %v1673_v5  ;;  %v6218_v22 = vsel %vm1631_vm4, %v1673_v5, %v1675_v50  ;;  %v7111_v50 = vld [vmem:[#allocation23_spill] sm:$0xff] }
  0x83   : > { %4758 = vmatprep.mubr.msk.f32.mxu1 %vm408_vm1, %v6156_v16  ;;  %4520 = vmatprep.mubr.msk.f32.mxu0 %vm408_vm1, %v5838_v27  ;;  %7102 = vst [vmem:[#allocation13_spill] sm:$0xff] %v6207_v55  ;;  %v7103_v27 = vld [vmem:[#allocation14_spill] sm:$0xff]  ;;  %v1685_v9 = vrot.slane %v7111_v50, 2 }
  0x84   : > { %v1677_v6 = vrot.slane %v7103_v27, 2  ;;  %7105 = vst [vmem:[#allocation14_spill] sm:$0xff] %v6218_v22 }
  0x86   : > { %4759 = vmatmul.mubr.msk.f32.gmra.mrb[8].mxu1 %vm408_vm1, %v6167_v2  ;;  %4521 = vmatmul.mubr.msk.f32.gmra.mrb[48].mxu0 %vm408_vm1, %v5869_v1 }
  0x87   : > { %4761 = vmatprep.mubr.msk.f32.mxu1 %vm408_vm1, %v6173_v11  ;;  %4523 = vmatprep.mubr.msk.f32.mxu0 %vm408_vm1, %v5876_v0  ;;  %v7108_v0 = vld [vmem:[#allocation19_spill] sm:$0xff] }
  0x88   : > { %v1682_v1 = vrot.slane %v7108_v0, 2 }
  0x8a   : > { %4762 = vmatmul.mubr.msk.f32.gmra.mrb[10].mxu1 %vm408_vm1, %v6184_v30  ;;  %v7104_v30 = vld [vmem:[#allocation15_spill] sm:$0xff]  ;;  %4524 = vmatmul.mubr.msk.f32.gmra.mrb[50].mxu0 %vm408_vm1, %v5894_v58 }
  0x8b   : > { %4764 = vmatprep.mubr.msk.f32.mxu1 %vm408_vm1, %v6190_v61  ;;  %v1678_v11 = vrot.slane %v7104_v30, 2  ;;  %4526 = vmatprep.mubr.msk.f32.mxu0 %vm408_vm1, %v5901_v63  ;;  %v7113_v63 = vld [vmem:[#allocation24_spill] sm:$0xff] }
  0x8c   : > { %v1687_v58 = vrot.slane %v7113_v63, 2 }
  0x8d   : > { %v6224_v43 = vsel %vm1631_vm4, %v1677_v6, %v1678_v11  ;;  %v6235_v5 = vsel %vm1631_vm4, %v1678_v11, %v1680_v56  ;;  %v7116_v56 = vld [vmem:[#allocation28_spill] sm:$0xff] }
  0x8e   : > { %4765 = vmatmul.mubr.msk.f32.gmra.mrb[12].mxu1 %vm408_vm1, %v6201_v8  ;;  %7107 = vst [vmem:[#allocation15_spill] sm:$0xff] %v6224_v43  ;;  %v7109_v8 = vld [vmem:[#allocation20_spill] sm:$0xff]  ;;  %4527 = vmatmul.mubr.msk.f32.gmra.mrb[52].mxu0 %vm408_vm1, %v5919_v29  ;;  %7110 = vst [vmem:[#allocation18_spill] sm:$0xff] %v6235_v5  ;;  %v1690_v50 = vrot.slane %v7116_v56, 2  ;;  %v7119_v29 = vld [vmem:[#allocation29_spill] sm:$0xff] }
  0x8f   : > { %4767 = vmatprep.mubr.msk.f32.mxu1 %vm408_vm1, %v6207_v55  ;;  %v1683_v61 = vrot.slane %v7109_v8, 2  ;;  %4529 = vmatprep.mubr.msk.f32.mxu0 %vm408_vm1, %v5926_v54 }
  0x91   : > { %v6241_v6 = vsel %vm1631_vm4, %v1682_v1, %v1683_v61  ;;  %v6252_v11 = vsel %vm1631_vm4, %v1683_v61, %v1685_v9  ;;  %v7117_v1 = vld [vmem:[#allocation37_spill] sm:$0xff] }
  0x92   : > { %4768 = vmatmul.mubr.msk.f32.gmra.mrb[14].mxu1 %vm408_vm1, %v6218_v22  ;;  %7112 = vst [vmem:[#allocation19_spill] sm:$0xff] %v6241_v6  ;;  %v7114_v22 = vld [vmem:[#allocation25_spill] sm:$0xff]  ;;  %4530 = vmatmul.mubr.msk.f32.gmra.mrb[54].mxu0 %vm408_vm1, %v5944_v51  ;;  %7115 = vst [vmem:[#allocation20_spill] sm:$0xff] %v6252_v11  ;;  %v7121_v51 = vld [vmem:[#allocation43_spill] sm:$0xff] }
  0x93   : > { %4770 = vmatprep.mubr.msk.f32.mxu1 %vm408_vm1, %v6224_v43  ;;  %v1688_v55 = vrot.slane %v7114_v22, 2  ;;  %4532 = vmatprep.mubr.msk.f32.mxu0 %vm408_vm1, %v7117_v1  ;;  %v1692_v43 = vrot.slane %v7119_v29, 2  ;;  %v7123_v9 = vld [vmem:[#allocation33_spill] sm:$0xff]  ;;  %v7124_v1 = vld [vmem:[#allocation34_spill] sm:$0xff] }
  0x94   : > { %v1695_v56 = vrot.slane %v7123_v9, 2 }
  0x95   : > { %v6258_v54 = vsel %vm1631_vm4, %v1687_v58, %v1688_v55  ;;  %v6269_v61 = vsel %vm1631_vm4, %v1688_v55, %v1690_v50  ;;  %v7127_v50 = vld [vmem:[#allocation38_spill] sm:$0xff] }
  0x96   : > { %4771 = vmatmul.mubr.msk.f32.gmra.mrb[16].mxu1 %vm408_vm1, %v6235_v5  ;;  %7118 = vst [vmem:[#allocation23_spill] sm:$0xff] %v6258_v54  ;;  %v7120_v5 = vld [vmem:[#allocation30_spill] sm:$0xff]  ;;  %4533 = vmatmul.mubr.msk.f32.gmra.mrb[56].mxu0 %vm408_vm1, %v7121_v51  ;;  %7122 = vst [vmem:[#allocation24_spill] sm:$0xff] %v6269_v61  ;;  %v1700_v9 = vrot.slane %v7127_v50, 2 }
  0x97   : > { %4773 = vmatprep.mubr.msk.f32.mxu1 %vm408_vm1, %v6241_v6  ;;  %v1693_v2 = vrot.slane %v7120_v5, 2  ;;  %4535 = vmatprep.mubr.msk.f32.mxu0 %vm408_vm1, %v5980_v49  ;;  %v1697_v6 = vrot.slane %v7124_v1, 2  ;;  %v7128_v49 = vld [vmem:[#allocation39_spill] sm:$0xff] }
  0x98   : > { %v1702_v51 = vrot.slane %v7128_v49, 2 }
  0x99   : > { %v6275_v58 = vsel %vm1631_vm4, %v1692_v43, %v1693_v2  ;;  %v6286_v55 = vsel %vm1631_vm4, %v1693_v2, %v1695_v56  ;;  %v7130_v56 = vld [vmem:[#allocation45_spill] sm:$0xff] }
  0x9a   : > { %4774 = vmatmul.mubr.msk.f32.gmra.mrb[18].mxu1 %vm408_vm1, %v6252_v11  ;;  %v7125_v11 = vld [vmem:[#allocation35_spill] sm:$0xff]  ;;  %4536 = vmatmul.mubr.msk.f32.gmra.mrb[58].mxu0 %vm408_vm1, %v6002_v52  ;;  %7126 = vst [vmem:[#allocation25_spill] sm:$0xff] %v6286_v55  ;;  %v1705_v50 = vrot.slane %v7130_v56, 2 }
  0x9b   : > { %4776 = vmatprep.mubr.msk.f32.mxu1 %vm408_vm1, %v6258_v54  ;;  %v1698_v16 = vrot.slane %v7125_v11, 2  ;;  %4538 = vmatprep.mubr.msk.f32.mxu0 %vm408_vm1, %v6009_v46  ;;  %v1707_v46 = vrot.slane %v5990_v41, 2  ;;  %v7131_v52 = vld [vmem:[#allocation47_spill] sm:$0xff] }
  0x9d   : > { %v6292_v43 = vsel %vm1631_vm4, %v1697_v6, %v1698_v16  ;;  %v6303_v2 = vsel %vm1631_vm4, %v1698_v16, %v1700_v9  ;;  %v1710_v9 = vrot.slane %v6014_v7, 2  ;;  %v2575_v7 = vrot.slane %v6039_v33, 2 }
  0x9e   : > { %4777 = vmatmul.mubr.msk.f32.gmra.mrb[20].mxu1 %vm408_vm1, %v6269_v61  ;;  %v7129_v61 = vld [vmem:[#allocation40_spill] sm:$0xff]  ;;  %4539 = vmatmul.mubr.msk.f32.gmra.mrb[60].mxu0 %vm408_vm1, %v6029_v32  ;;  %v2573_v32 = vrot.slane %v6019_v38, 2 }
  0x9f   : > { %4779 = vmatprep.mubr.msk.f32.mxu1 %vm408_vm1, %v6275_v58  ;;  %v1703_v54 = vrot.slane %v7129_v61, 2  ;;  %4541 = vmatprep.mubr.msk.f32.mxu0 %vm408_vm1, %v6035_v40  ;;  %v2572_v40 = vrot.slane %v6017_v53, 2 }
  0xa1   : > { %v6309_v6 = vsel %vm1631_vm4, %v1702_v51, %v1703_v54  ;;  %v6320_v16 = vsel %vm1631_vm4, %v1703_v54, %v1705_v50  ;;  %v7132_v51 = vld [vmem:[#allocation41_spill] sm:$0xff]  ;;  %v6335_v54 = vld [vmem:[%s6897_s3 + $0xc] sm:$0xf] }
  0xa2   : > { %4780 = vmatmul.mubr.msk.f32.gmra.mrb[22].mxu1 %vm408_vm1, %v6286_v55  ;;  %v1708_v55 = vrot.slane %v7131_v52, 2  ;;  %4542 = vmatmul.mubr.msk.f32.gmra.mrb[62].mxu0 %vm408_vm1, %v6052_v21  ;;  %v7133_v50 = vld [vmem:[#allocation42_spill] sm:$0xff]  ;;  %v6348_v21 = vsel %vm1631_vm4, %v2572_v40, %v2573_v32  ;;  %v7143_v40 = vld [vmem:[#allocation7_spill] sm:$0xff] }
  0xa3   : > { %4782 = vmatprep.mubr.msk.f32.mxu1 %vm408_vm1, %v6292_v43  ;;  %4546 = vmatprep.mubr.msk.f32.mxu0 %vm408_vm1, %v7132_v51 }
  0xa4   : > { %v6326_v56 = vsel %vm1631_vm4, %v1707_v46, %v1708_v55  ;;  %v6342_v46 = vsel %vm1631_vm4, %v1708_v55, %v1710_v9  ;;  %v7149_v9 = vld [vmem:[#allocation14_spill] sm:$0xff] }
  0xa6   : > { %4783 = vmatmul.mubr.msk.f32.gmra.mrb[24].mxu1 %vm408_vm1, %v6303_v2  ;;  %4547 = vmatmul.mubr.msk.f32.vlgmr.msra.gmra.mrb[32].mxu0 %vm408_vm1, %v7133_v50 }
  0xa7   : > { %4785 = vmatprep.mubr.msk.f32.mxu1 %vm408_vm1, %v6309_v6  ;;  %4549 = vmatprep.mubr.msk.f32.mxu0 %vm408_vm1, %v5495_v12  ;;  %v6361_v12 = vsel %vm1631_vm4, %v2573_v32, %v2575_v7  ;;  %v7144_v32 = vld [vmem:[#allocation11_spill] sm:$0xff]  ;;  %v7152_v7 = vld [vmem:[#allocation21_spill] sm:$0xff] }
  0xa8   : > { %4595 = vmatpush3.msk.msra.mxu0 %vm505_vm0, %v6046_v45  ;;  %v7145_v45 = vld [vmem:[#allocation10_spill] sm:$0xff] }
  0xa9   : > { %4644 = vmatprep.subr.msk.mxu0 %vm505_vm0, %v6335_v54 }
  0xaa   : > { %4786 = vmatmul.mubr.msk.f32.gmra.mrb[26].mxu1 %vm408_vm1, %v6320_v16  ;;  %4550 = vmatmul.mubr.msk.f32.gmra.mrb[34].mxu0 %vm408_vm1, %v5497_v13  ;;  %v6378_v13 = vld [vmem:[%s6897_s3 + $0x20] sm:$0xf] }
  0xab   : > { %4788 = vmatprep.mubr.msk.f32.mxu1 %vm408_vm1, %v6326_v56  ;;  %4552 = vmatprep.mubr.msk.f32.mxu0 %vm408_vm1, %v5514_v19 }
  0xae   : > { %4789 = vmatmul.mubr.msk.f32.gmra.mrb[28].mxu1 %vm408_vm1, %v6342_v46  ;;  %4553 = vmatmul.mubr.msk.f32.gmra.mrb[36].mxu0 %vm408_vm1, %v5516_v20 }
  0xaf   : > { %4791 = vmatprep.mubr.msk.f32.mxu1 %vm408_vm1, %v6348_v21  ;;  %4555 = vmatprep.mubr.msk.f32.mxu0 %vm408_vm1, %v5529_v26 }
  0xb2   : > { %4792 = vmatmul.mubr.msk.f32.gmra.mrb[30].mxu1 %vm408_vm1, %v6361_v12  ;;  %4556 = vmatmul.mubr.msk.f32.gmra.mrb[38].mxu0 %vm408_vm1, %v5531_v28 }
  0xb3   : > { %4796 = vmatprep.mubr.msk.f32.mxu1 %vm408_vm1, %v5514_v19  ;;  %4558 = vmatprep.mubr.msk.f32.mxu0 %vm408_vm1, %v5555_v36  ;;  %v1633_v19 = vrot.slane %v7133_v50, 2  ;;  %v7151_v50 = vld [vmem:[#allocation15_spill] sm:$0xff] }
  0xb6   : > { %4797 = vmatmul.mubr.msk.f32.vlgmr.msra.gmra.mrb[0].mxu1 %vm408_vm1, %v5516_v20  ;;  %4559 = vmatmul.mubr.msk.f32.gmra.mrb[40].mxu0 %vm408_vm1, %v5557_v37  ;;  %v7134_v20 = vld [vmem:[#allocation46_spill] sm:$0xff] }
  0xb7   : > { %4845 = vmatpush3.msk.msra.mxu1 %vm505_vm0, %v6105_v60  ;;  %4799 = vmatprep.mubr.msk.f32.mxu1 %vm408_vm1, %v5529_v26  ;;  %v1635_v26 = vrot.slane %v7134_v20, 2  ;;  %v7147_v60 = vld [vmem:[#allocation13_spill] sm:$0xff] }
  0xb8   : > { %4894 = vmatprep.subr.msk.mxu1 %vm505_vm0, %v6378_v13  ;;  %4561 = vmatprep.mubr.msk.f32.mxu0 %vm408_vm1, %v5601_v42 }
  0xba   : > { %4800 = vmatmul.mubr.msk.f32.gmra.mrb[2].mxu1 %vm408_vm1, %v5531_v28  ;;  %4562 = vmatmul.mubr.msk.f32.gmra.mrb[42].mxu0 %vm408_vm1, %v5607_v62 }
  0xbb   : > { %4802 = vmatprep.mubr.msk.f32.mxu1 %vm408_vm1, %v5555_v36  ;;  %4564 = vmatprep.mubr.msk.f32.mxu0 %vm408_vm1, %v5623_v10  ;;  %v1636_v36 = vsel %vm1631_vm4, %v1633_v19, %v1635_v26  ;;  %v7155_v26 = vld [vmem:[#allocation19_spill] sm:$0xff] }
  0xbe   : > { %4803 = vmatmul.mubr.msk.f32.gmra.mrb[4].mxu1 %vm408_vm1, %v5557_v37  ;;  %4565 = vmatmul.mubr.msk.f32.gmra.mrb[44].mxu0 %vm408_vm1, %v5644_v24  ;;  %v6497_v37 = vld [vmem:[#allocation2 + $0x198] sm:$0xff] }
  0xbf   : > { %4805 = vmatprep.mubr.msk.f32.mxu1 %vm408_vm1, %v5601_v42  ;;  %4567 = vmatprep.mubr.msk.f32.mxu0 %vm408_vm1, %v7095_v15  ;;  %v6507_v42 = vld [vmem:[#allocation2 + $0x1a0] sm:$0xff] }
  0xc2   : > { %4806 = vmatmul.mubr.msk.f32.gmra.mrb[6].mxu1 %vm408_vm1, %v5607_v62  ;;  %4568 = vmatmul.mubr.msk.f32.gmra.mrb[46].mxu0 %vm408_vm1, %v7096_v3  ;;  %v7137_v62 = vld [vmem:[#allocation56_spill] sm:$0xff] }
  0xc3   : > { %4808 = vmatprep.mubr.msk.f32.mxu1 %vm408_vm1, %v5623_v10  ;;  %4570 = vmatprep.mubr.msk.f32.mxu0 %vm408_vm1, %v5762_v59  ;;  %v7138_v10 = vld [vmem:[#allocation6_spill] sm:$0xff] }
  0xc6   : > { %4809 = vmatmul.mubr.msk.f32.gmra.mrb[8].mxu1 %vm408_vm1, %v5644_v24  ;;  %4571 = vmatmul.mubr.msk.f32.gmra.mrb[48].mxu0 %vm408_vm1, %v7099_v57  ;;  %v7140_v24 = vld [vmem:[#allocation8_spill] sm:$0xff] }
  0xc7   : > { %4811 = vmatprep.mubr.msk.f32.mxu1 %vm408_vm1, %v7095_v15  ;;  %4573 = vmatprep.mubr.msk.f32.mxu0 %vm408_vm1, %v7103_v27  ;;  %v1632_v15 = vrot.slane %v7132_v51, 2  ;;  %v7150_v51 = vld [vmem:[#allocation17_spill] sm:$0xff] }
  0xc9   : > { %v1634_v28 = vsel %vm1631_vm4, %v1632_v15, %v1633_v19  ;;  %v7153_v15 = vld [vmem:[#allocation18_spill] sm:$0xff] }
  0xca   : > { %4812 = vmatmul.mubr.msk.f32.gmra.mrb[10].mxu1 %vm408_vm1, %v7096_v3  ;;  %4574 = vmatmul.mubr.msk.f32.gmra.mrb[50].mxu0 %vm408_vm1, %v7104_v30  ;;  %v7154_v19 = vld [vmem:[#allocation22_spill] sm:$0xff] }
  0xcb   : > { %4814 = vmatprep.mubr.msk.f32.mxu1 %vm408_vm1, %v5762_v59  ;;  %4576 = vmatprep.mubr.msk.f32.mxu0 %vm408_vm1, %v7108_v0  ;;  %v7141_v59 = vld [vmem:[#allocation5_spill] sm:$0xff] }
  0xce   : > { %4815 = vmatmul.mubr.msk.f32.gmra.mrb[12].mxu1 %vm408_vm1, %v7099_v57  ;;  %4577 = vmatmul.mubr.msk.f32.gmra.mrb[52].mxu0 %vm408_vm1, %v7109_v8  ;;  %v7142_v57 = vld [vmem:[#allocation9_spill] sm:$0xff] }
  0xcf   : > { %4817 = vmatprep.mubr.msk.f32.mxu1 %vm408_vm1, %v7103_v27  ;;  %4579 = vmatprep.mubr.msk.f32.mxu0 %vm408_vm1, %v7113_v63 }
  0xd2   : > { %4818 = vmatmul.mubr.msk.f32.gmra.mrb[14].mxu1 %vm408_vm1, %v7104_v30  ;;  %4580 = vmatmul.mubr.msk.f32.gmra.mrb[54].mxu0 %vm408_vm1, %v7114_v22  ;;  %v7148_v30 = vld [vmem:[#allocation16_spill] sm:$0xff] }
  0xd3   : > { %4820 = vmatprep.mubr.msk.f32.mxu1 %vm408_vm1, %v7108_v0  ;;  %4582 = vmatprep.mubr.msk.f32.mxu0 %vm408_vm1, %v7119_v29 }
  0xd6   : > { %4821 = vmatmul.mubr.msk.f32.gmra.mrb[16].mxu1 %vm408_vm1, %v7109_v8  ;;  %4583 = vmatmul.mubr.msk.f32.gmra.mrb[56].mxu0 %vm408_vm1, %v7120_v5 }
  0xd7   : > { %4823 = vmatprep.mubr.msk.f32.mxu1 %vm408_vm1, %v7113_v63  ;;  %4585 = vmatprep.mubr.msk.f32.mxu0 %vm408_vm1, %v7124_v1 }
  0xda   : > { %4824 = vmatmul.mubr.msk.f32.gmra.mrb[18].mxu1 %vm408_vm1, %v7114_v22  ;;  %4586 = vmatmul.mubr.msk.f32.gmra.mrb[58].mxu0 %vm408_vm1, %v7125_v11 }
  0xdb   : > { %4826 = vmatprep.mubr.msk.f32.mxu1 %vm408_vm1, %v7119_v29  ;;  %4588 = vmatprep.mubr.msk.f32.mxu0 %vm408_vm1, %v7128_v49 }
  0xde   : > { %4827 = vmatmul.mubr.msk.f32.gmra.mrb[20].mxu1 %vm408_vm1, %v7120_v5  ;;  %4589 = vmatmul.mubr.msk.f32.gmra.mrb[60].mxu0 %vm408_vm1, %v7129_v61 }
  0xdf   : > { %4829 = vmatprep.mubr.msk.f32.mxu1 %vm408_vm1, %v7124_v1  ;;  %4591 = vmatprep.mubr.msk.f32.mxu0 %vm408_vm1, %v5990_v41 }
  0xe2   : > { %4830 = vmatmul.mubr.msk.f32.gmra.mrb[22].mxu1 %vm408_vm1, %v7125_v11  ;;  %4592 = vmatmul.mubr.msk.f32.gmra.mrb[62].mxu0 %vm408_vm1, %v7131_v52 }
  0xe3   : > { %4832 = vmatprep.mubr.msk.f32.mxu1 %vm408_vm1, %v7128_v49  ;;  %4596 = vmatprep.mubr.msk.f32.mxu0 %vm408_vm1, %v1634_v28  ;;  %v7156_v28 = vld [vmem:[#allocation26_spill] sm:$0xff] }
  0xe6   : > { %4833 = vmatmul.mubr.msk.f32.gmra.mrb[24].mxu1 %vm408_vm1, %v7129_v61  ;;  %4597 = vmatmul.mubr.msk.f32.vlgmr.msra.gmra.mrb[32].mxu0 %vm408_vm1, %v1636_v36 }
  0xe7   : > { %4835 = vmatprep.mubr.msk.f32.mxu1 %vm408_vm1, %v5990_v41  ;;  %4599 = vmatprep.mubr.msk.f32.mxu0 %vm408_vm1, %v6079_v48  ;;  %v7146_v48 = vld [vmem:[#allocation12_spill] sm:$0xff] }
  0xe8   : > { %4645 = vmatpush3.msk.msra.mxu0 %vm505_vm0, %v6335_v54 }
  0xea   : > { %4836 = vmatmul.mubr.msk.f32.gmra.mrb[26].mxu1 %vm408_vm1, %v7131_v52  ;;  %4600 = vmatmul.mubr.msk.f32.gmra.mrb[34].mxu0 %vm408_vm1, %v6090_v14 }
  0xeb   : > { %4838 = vmatprep.mubr.msk.f32.mxu1 %vm408_vm1, %v6017_v53  ;;  %4602 = vmatprep.mubr.msk.f32.mxu0 %vm408_vm1, %v6098_v23 }
  0xee   : > { %4839 = vmatmul.mubr.msk.f32.gmra.mrb[28].mxu1 %vm408_vm1, %v6019_v38  ;;  %4603 = vmatmul.mubr.msk.f32.gmra.mrb[36].mxu0 %vm408_vm1, %v6112_v25 }
  0xef   : > { %4841 = vmatprep.mubr.msk.f32.mxu1 %vm408_vm1, %v6497_v37  ;;  %4605 = vmatprep.mubr.msk.f32.mxu0 %vm408_vm1, %v6120_v47 }
  0xf2   : > { %4842 = vmatmul.mubr.msk.f32.gmra.mrb[30].mxu1 %vm408_vm1, %v6507_v42  ;;  %4606 = vmatmul.mubr.msk.f32.gmra.mrb[38].mxu0 %vm408_vm1, %v6133_v34 }
  0xf3   : > { %4846 = vmatprep.mubr.msk.f32.mxu1 %vm408_vm1, %v5562_v35  ;;  %4608 = vmatprep.mubr.msk.f32.mxu0 %vm408_vm1, %v6139_v31  ;;  %v7135_v35 = vld [vmem:[#allocation55_spill] sm:$0xff] }
  0xf6   : > { %4847 = vmatmul.mubr.msk.f32.vlgmr.msra.gmra.mrb[0].mxu1 %vm408_vm1, %v5577_v44  ;;  %4609 = vmatmul.mubr.msk.f32.gmra.mrb[40].mxu0 %vm408_vm1, %v6150_v39  ;;  %v7136_v44 = vld [vmem:[#allocation3_spill] sm:$0xff] }
  0xf7   : > { %4895 = vmatpush3.msk.msra.mxu1 %vm505_vm0, %v6378_v13  ;;  %4849 = vmatprep.mubr.msk.f32.mxu1 %vm408_vm1, %v5599_v4  ;;  %v4448_v4 = vpop.f32.mrb[0].mxu0 }
  0xf8   : > { %4611 = vmatprep.mubr.msk.f32.mxu0 %vm408_vm1, %v7135_v35  ;;  %736 = vst.msk [vmem:[%s6541_s30 + $0x8] sm:$0xff] %vm734_vm5, %v4448_v4  ;;  %v7158_v4 = vld [vmem:[#allocation27_spill] sm:$0xff] }
  0xfa   : > { %4850 = vmatmul.mubr.msk.f32.gmra.mrb[2].mxu1 %vm408_vm1, %v5635_v17  ;;  %4612 = vmatmul.mubr.msk.f32.gmra.mrb[42].mxu0 %vm408_vm1, %v7137_v62  ;;  %v575_v17 = vpop.f32.mrb[1].mxu0 }
  0xfb   : > { %4852 = vmatprep.mubr.msk.f32.mxu1 %vm408_vm1, %v5638_v18  ;;  %v7139_v18 = vld [vmem:[#allocation4_spill] sm:$0xff]  ;;  %735 = vst.msk [vmem:[%s6541_s30] sm:$0xff] %vm734_vm5, %v575_v17  ;;  %v4451_v3 = vpop.f32.mrb[2].mxu0  ;;  %v7159_v17 = vld [vmem:[#allocation23_spill] sm:$0xff] }
  0xfc   : > { %4614 = vmatprep.mubr.msk.f32.mxu0 %vm408_vm1, %v7139_v18  ;;  %738 = vst.msk [vmem:[%s6541_s30 + $0x18] sm:$0xff] %vm734_vm5, %v4451_v3  ;;  %v585_v27 = vpop.f32.mrb[3].mxu0 }
  0xfd   : > { %737 = vst.msk [vmem:[%s6541_s30 + $0x10] sm:$0xff] %vm734_vm5, %v585_v27  ;;  %v4454_v33 = vpop.f32.mrb[4].mxu0  ;;  %v7162_v27 = vld [vmem:[#allocation32_spill] sm:$0xff] }
  0xfe   : > { %4853 = vmatmul.mubr.msk.f32.gmra.mrb[4].mxu1 %vm408_vm1, %v7136_v44  ;;  %4615 = vmatmul.mubr.msk.f32.gmra.mrb[44].mxu0 %vm408_vm1, %v7141_v59  ;;  %740 = vst.msk [vmem:[%s6541_s30 + $0x28] sm:$0xff] %vm734_vm5, %v4454_v33  ;;  %v595_v14 = vpop.f32.mrb[5].mxu0  ;;  %v7157_v44 = vld [vmem:[#allocation20_spill] sm:$0xff] }
  0xff   : > { %4855 = vmatprep.mubr.msk.f32.mxu1 %vm408_vm1, %v7138_v10  ;;  %4617 = vmatprep.mubr.msk.f32.mxu0 %vm408_vm1, %v7143_v40  ;;  %739 = vst.msk [vmem:[%s6541_s30 + $0x20] sm:$0xff] %vm734_vm5, %v595_v14  ;;  %v4457_v55 = vpop.f32.mrb[6].mxu0  ;;  %v7163_v33 = vld [vmem:[#allocation36_spill] sm:$0xff]  ;;  %v7164_v14 = vld [vmem:[#allocation25_spill] sm:$0xff] }
 0x100   : > { %742 = vst.msk [vmem:[%s6541_s30 + $0x38] sm:$0xff] %vm734_vm5, %v4457_v55  ;;  %v605_v54 = vpop.f32.mrb[7].mxu0 }
 0x101   : > { %741 = vst.msk [vmem:[%s6541_s30 + $0x30] sm:$0xff] %vm734_vm5, %v605_v54  ;;  %v4460_v13 = vpop.f32.mrb[8].mxu0 }
 0x102   : > { %4856 = vmatmul.mubr.msk.f32.gmra.mrb[6].mxu1 %vm408_vm1, %v7140_v24  ;;  %4618 = vmatmul.mubr.msk.f32.gmra.mrb[46].mxu0 %vm408_vm1, %v7145_v45  ;;  %744 = vst.msk [vmem:[%s6541_s30 + $0x48] sm:$0xff] %vm734_vm5, %v4460_v13  ;;  %v615_v20 = vpop.f32.mrb[9].mxu0  ;;  %v7160_v24 = vld [vmem:[#allocation31_spill] sm:$0xff] }
 0x103   : > { %4858 = vmatprep.mubr.msk.f32.mxu1 %vm408_vm1, %v7142_v57  ;;  %4620 = vmatprep.mubr.msk.f32.mxu0 %vm408_vm1, %v7147_v60  ;;  %743 = vst.msk [vmem:[%s6541_s30 + $0x40] sm:$0xff] %vm734_vm5, %v615_v20  ;;  %v4463_v36 = vpop.f32.mrb[10].mxu0  ;;  %v7161_v57 = vld [vmem:[#allocation24_spill] sm:$0xff] }
 0x104   : > { %746 = vst.msk [vmem:[%s6541_s30 + $0x58] sm:$0xff] %vm734_vm5, %v4463_v36  ;;  %v625_v10 = vpop.f32.mrb[11].mxu0 }
 0x105   : > { %745 = vst.msk [vmem:[%s6541_s30 + $0x50] sm:$0xff] %vm734_vm5, %v625_v10 }
 0x106   : > { %4859 = vmatmul.mubr.msk.f32.gmra.mrb[8].mxu1 %vm408_vm1, %v7144_v32  ;;  %4621 = vmatmul.mubr.msk.f32.gmra.mrb[48].mxu0 %vm408_vm1, %v7149_v9  ;;  %v4466_v3 = vpop.f32.mrb[12].mxu0 }
 0x107   : > { %4861 = vmatprep.mubr.msk.f32.mxu1 %vm408_vm1, %v7146_v48  ;;  %4623 = vmatprep.mubr.msk.f32.mxu0 %vm408_vm1, %v7151_v50  ;;  %748 = vst.msk [vmem:[%s6541_s30 + $0x68] sm:$0xff] %vm734_vm5, %v4466_v3  ;;  %v635_v32 = vpop.f32.mrb[13].mxu0 }
 0x108   : > { %747 = vst.msk [vmem:[%s6541_s30 + $0x60] sm:$0xff] %vm734_vm5, %v635_v32  ;;  %v3109_v32 = vrot.slane %v6507_v42, 1 }
 0x10a   : > { %4862 = vmatmul.mubr.msk.f32.gmra.mrb[10].mxu1 %vm408_vm1, %v7148_v30  ;;  %4624 = vmatmul.mubr.msk.f32.gmra.mrb[50].mxu0 %vm408_vm1, %v7153_v15  ;;  %v7165_v30 = vld [vmem:[#allocation37_spill] sm:$0xff] }
 0x10b   : > { %4864 = vmatprep.mubr.msk.f32.mxu1 %vm408_vm1, %v7150_v51  ;;  %4626 = vmatprep.mubr.msk.f32.mxu0 %vm408_vm1, %v7155_v26  ;;  %v7166_v51 = vld [vmem:[#allocation43_spill] sm:$0xff] }
 0x10e   : > { %4865 = vmatmul.mubr.msk.f32.gmra.mrb[12].mxu1 %vm408_vm1, %v7152_v7  ;;  %4627 = vmatmul.mubr.msk.f32.gmra.mrb[52].mxu0 %vm408_vm1, %v7157_v44  ;;  %v7167_v7 = vld [vmem:[#allocation44_spill] sm:$0xff] }
 0x10f   : > { %4867 = vmatprep.mubr.msk.f32.mxu1 %vm408_vm1, %v7154_v19  ;;  %4629 = vmatprep.mubr.msk.f32.mxu0 %vm408_vm1, %v7159_v17  ;;  %v7168_v19 = vld [vmem:[#allocation48_spill] sm:$0xff] }
 0x112   : > { %4868 = vmatmul.mubr.msk.f32.gmra.mrb[14].mxu1 %vm408_vm1, %v7156_v28  ;;  %4630 = vmatmul.mubr.msk.f32.gmra.mrb[54].mxu0 %vm408_vm1, %v7161_v57  ;;  %v7169_v28 = vld [vmem:[#allocation49_spill] sm:$0xff] }
 0x113   : > { %4870 = vmatprep.mubr.msk.f32.mxu1 %vm408_vm1, %v7158_v4  ;;  %4632 = vmatprep.mubr.msk.f32.mxu0 %vm408_vm1, %v6275_v58  ;;  %v7170_v4 = vld [vmem:[#allocation50_spill] sm:$0xff] }
 0x114   : > { %v4469_v48 = vpop.f32.mrb[14].mxu0 }
 0x115   : > { %750 = vst.msk [vmem:[%s6541_s30 + $0x78] sm:$0xff] %vm734_vm5, %v4469_v48  ;;  %v645_v55 = vpop.f32.mrb[15].mxu0  ;;  %v6676_v48 = vld [vmem:[#allocation2 + $0x1a8] sm:$0x3] }
 0x116   : > { %4871 = vmatmul.mubr.msk.f32.gmra.mrb[16].mxu1 %vm408_vm1, %v7160_v24  ;;  %4633 = vmatmul.mubr.msk.f32.gmra.mrb[56].mxu0 %vm408_vm1, %v7164_v14  ;;  %749 = vst.msk [vmem:[%s6541_s30 + $0x70] sm:$0xff] %vm734_vm5, %v645_v55  ;;  %v7171_v24 = vld [vmem:[#allocation51_spill] sm:$0xff] }
 0x117   : > { %4873 = vmatprep.mubr.msk.f32.mxu1 %vm408_vm1, %v7162_v27  ;;  %4635 = vmatprep.mubr.msk.f32.mxu0 %vm408_vm1, %v6292_v43  ;;  %v3108_v27 = vrot.slane %v6497_v37, 1 }
 0x119   : > { %v4472_v54 = vpop.f32.mrb[16].mxu0 }
 0x11a   : > { %4874 = vmatmul.mubr.msk.f32.gmra.mrb[18].mxu1 %vm408_vm1, %v7163_v33  ;;  %4636 = vmatmul.mubr.msk.f32.gmra.mrb[58].mxu0 %vm408_vm1, %v6303_v2  ;;  %752 = vst.msk [vmem:[%s6541_s30 + $0x88] sm:$0xff] %vm734_vm5, %v4472_v54  ;;  %v655_v13 = vpop.f32.mrb[17].mxu0  ;;  %v5209_v33 = vld [vmem:[#allocation2 + $0x18] sm:$0xff]  ;;  %v7173_v54 = vld [vmem:[#allocation53_spill] sm:$0xff] }
 0x11b   : > { %4876 = vmatprep.mubr.msk.f32.mxu1 %vm408_vm1, %v7165_v30  ;;  %4638 = vmatprep.mubr.msk.f32.mxu0 %vm408_vm1, %v6309_v6  ;;  %751 = vst.msk [vmem:[%s6541_s30 + $0x80] sm:$0xff] %vm734_vm5, %v655_v13  ;;  %v7172_v30 = vld [vmem:[#allocation52_spill] sm:$0xff] }
 0x11d   : > { %v4475_v20 = vpop.f32.mrb[18].mxu0 }
 0x11e   : > { %4877 = vmatmul.mubr.msk.f32.gmra.mrb[20].mxu1 %vm408_vm1, %v7166_v51  ;;  %4639 = vmatmul.mubr.msk.f32.gmra.mrb[60].mxu0 %vm408_vm1, %v6320_v16  ;;  %754 = vst.msk [vmem:[%s6541_s30 + $0x98] sm:$0xff] %vm734_vm5, %v4475_v20  ;;  %v665_v36 = vpop.f32.mrb[19].mxu0  ;;  %v5210_v51 = vld [vmem:[#allocation2 + $0x20] sm:$0xff]  ;;  %v3110_v20 = vsel %vm966_vm3, %v3108_v27, %v3109_v32 }
 0x11f   : > { %4879 = vmatprep.mubr.msk.f32.mxu1 %vm408_vm1, %v7167_v7  ;;  %4641 = vmatprep.mubr.msk.f32.mxu0 %vm408_vm1, %v6326_v56  ;;  %753 = vst.msk [vmem:[%s6541_s30 + $0x90] sm:$0xff] %vm734_vm5, %v665_v36  ;;  %v3111_v7 = vrot.slane %v6676_v48, 1 }
 0x121   : > { %v4478_v10 = vpop.f32.mrb[20].mxu0 }
 0x122   : > { %4880 = vmatmul.mubr.msk.f32.gmra.mrb[22].mxu1 %vm408_vm1, %v7168_v19  ;;  %4642 = vmatmul.mubr.msk.f32.gmra.mrb[62].mxu0 %vm408_vm1, %v6342_v46  ;;  %756 = vst.msk [vmem:[%s6541_s30 + $0xa8] sm:$0xff] %vm734_vm5, %v4478_v10  ;;  %v675_v3 = vpop.f32.mrb[21].mxu0  ;;  %v5211_v19 = vld [vmem:[#allocation2 + $0x30] sm:$0xff]  ;;  %v3112_v10 = vsel %vm966_vm3, %v3109_v32, %v3111_v7  ;;  %v5218_v7 = vld [vmem:[#allocation2 + $0x80] sm:$0xff] }
 0x123   : > { %4882 = vmatprep.mubr.msk.f32.mxu1 %vm408_vm1, %v7169_v28  ;;  %4646 = vmatprep.mubr.msk.f32.mxu0 %vm408_vm1, %v5209_v33  ;;  %755 = vst.msk [vmem:[%s6541_s30 + $0xa0] sm:$0xff] %vm734_vm5, %v675_v3  ;;  %v7174_v28 = vld [vmem:[#allocation54_spill] sm:$0xff]  ;;  %v5214_v33 = vld [vmem:[#allocation2 + $0x50] sm:$0xff] }
 0x124   : > { %v5213_v3 = vld [vmem:[#allocation2 + $0x48] sm:$0xff] }
 0x125   : > { %v4481_v55 = vpop.f32.mrb[22].mxu0 }
 0x126   : > { %4883 = vmatmul.mubr.msk.f32.gmra.mrb[24].mxu1 %vm408_vm1, %v7170_v4  ;;  %4647 = vmatmul.mubr.msk.f32.vlgmr.msra.gmra.mrb[32].mxu0 %vm408_vm1, %v5210_v51  ;;  %758 = vst.msk [vmem:[%s6541_s30 + $0xb8] sm:$0xff] %vm734_vm5, %v4481_v55  ;;  %v685_v13 = vpop.f32.mrb[23].mxu0  ;;  %v5212_v4 = vld [vmem:[#allocation2 + $0x38] sm:$0xff]  ;;  %v5216_v51 = vld [vmem:[#allocation2 + $0x68] sm:$0xff] }
 0x127   : > { %4885 = vmatprep.mubr.msk.f32.mxu1 %vm408_vm1, %v7171_v24  ;;  %4649 = vmatprep.mubr.msk.f32.mxu0 %vm408_vm1, %v5211_v19  ;;  %757 = vst.msk [vmem:[%s6541_s30 + $0xb0] sm:$0xff] %vm734_vm5, %v685_v13  ;;  %v5219_v13 = vld [vmem:[#allocation2 + $0x90] sm:$0xff]  ;;  %v5220_v19 = vld [vmem:[#allocation2 + $0x98] sm:$0xff] }
 0x129   : > { %v4484_v36 = vpop.f32.mrb[24].mxu0 }
 0x12a   : > { %4886 = vmatmul.mubr.msk.f32.gmra.mrb[26].mxu1 %vm408_vm1, %v7172_v30  ;;  %4650 = vmatmul.mubr.msk.f32.gmra.mrb[34].mxu0 %vm408_vm1, %v5212_v4  ;;  %760 = vst.msk [vmem:[%s6541_s30 + $0xc8] sm:$0xff] %vm734_vm5, %v4484_v36  ;;  %v695_v24 = vpop.f32.mrb[25].mxu0  ;;  %v5215_v30 = vld [vmem:[#allocation2 + $0x60] sm:$0xff] }
 0x12b   : > { %4888 = vmatprep.mubr.msk.f32.mxu1 %vm408_vm1, %v7173_v54  ;;  %4652 = vmatprep.mubr.msk.f32.mxu0 %vm408_vm1, %v5213_v3  ;;  %759 = vst.msk [vmem:[%s6541_s30 + $0xc0] sm:$0xff] %vm734_vm5, %v695_v24  ;;  %v5217_v54 = vld [vmem:[#allocation2 + $0x78] sm:$0xff] }
 0x12d   : > { %v4487_v27 = vpop.f32.mrb[26].mxu0 }
 0x12e   : > { %4889 = vmatmul.mubr.msk.f32.gmra.mrb[28].mxu1 %vm408_vm1, %v7174_v28  ;;  %4653 = vmatmul.mubr.msk.f32.gmra.mrb[36].mxu0 %vm408_vm1, %v5214_v33  ;;  %762 = vst.msk [vmem:[%s6541_s30 + $0xd8] sm:$0xff] %vm734_vm5, %v4487_v27  ;;  %v705_v32 = vpop.f32.mrb[27].mxu0 }
 0x12f   : > { %4891 = vmatprep.mubr.msk.f32.mxu1 %vm408_vm1, %v3110_v20  ;;  %4655 = vmatprep.mubr.msk.f32.mxu0 %vm408_vm1, %v5215_v30  ;;  %761 = vst.msk [vmem:[%s6541_s30 + $0xd0] sm:$0xff] %vm734_vm5, %v705_v32  ;;  %v5223_v20 = vld [vmem:[#allocation2 + $0xc0] sm:$0xff] }
 0x131   : > { %v4490_v55 = vpop.f32.mrb[28].mxu0 }
 0x132   : > { %4892 = vmatmul.mubr.msk.f32.gmra.mrb[30].mxu1 %vm408_vm1, %v3112_v10  ;;  %4656 = vmatmul.mubr.msk.f32.gmra.mrb[38].mxu0 %vm408_vm1, %v5216_v51  ;;  %764 = vst.msk [vmem:[%s6541_s30 + $0xe8] sm:$0xff] %vm734_vm5, %v4490_v55 }
 0x133   : > { %4896 = vmatprep.mubr.msk.f32.mxu1 %vm408_vm1, %v6098_v23  ;;  %v715_v23 = vpop.f32.mrb[29].mxu0  ;;  %4658 = vmatprep.mubr.msk.f32.mxu0 %vm408_vm1, %v5217_v54 }
 0x134   : > { %763 = vst.msk [vmem:[%s6541_s30 + $0xe0] sm:$0xff] %vm734_vm5, %v715_v23 }
 0x136   : > { %4897 = vmatmul.mubr.msk.f32.vlgmr.msra.gmra.mrb[0].mxu1 %vm408_vm1, %v6112_v25  ;;  %v4493_v25 = vpop.f32.mrb[30].mxu0  ;;  %4659 = vmatmul.mubr.msk.f32.gmra.mrb[40].mxu0 %vm408_vm1, %v5218_v7 }
 0x137   : > { %4899 = vmatprep.mubr.msk.f32.mxu1 %vm408_vm1, %v6120_v47  ;;  %766 = vst.msk [vmem:[%s6541_s30 + $0xf8] sm:$0xff] %vm734_vm5, %v4493_v25  ;;  %v725_v47 = vpop.f32.mrb[31].mxu0  ;;  %4661 = vmatprep.mubr.msk.f32.mxu0 %vm408_vm1, %v5219_v13 }
 0x138   : > { %765 = vst.msk [vmem:[%s6541_s30 + $0xf0] sm:$0xff] %vm734_vm5, %v725_v47 }
 0x13a   : > { %4900 = vmatmul.mubr.msk.f32.gmra.mrb[2].mxu1 %vm408_vm1, %v6133_v34  ;;  %4662 = vmatmul.mubr.msk.f32.gmra.mrb[42].mxu0 %vm408_vm1, %v5220_v19  ;;  %v5221_v34 = vld [vmem:[#allocation2 + $0xa8] sm:$0xff] }
 0x13b   : > { %4902 = vmatprep.mubr.msk.f32.mxu1 %vm408_vm1, %v6139_v31  ;;  %4664 = vmatprep.mubr.msk.f32.mxu0 %vm408_vm1, %v5221_v34  ;;  %v5222_v31 = vld [vmem:[#allocation2 + $0xb0] sm:$0xff] }
 0x13e   : > { %4903 = vmatmul.mubr.msk.f32.gmra.mrb[4].mxu1 %vm408_vm1, %v6150_v39  ;;  %4665 = vmatmul.mubr.msk.f32.gmra.mrb[44].mxu0 %vm408_vm1, %v5222_v31  ;;  %v5224_v39 = vld [vmem:[#allocation2 + $0xc8] sm:$0xff] }
 0x13f   : > { %4905 = vmatprep.mubr.msk.f32.mxu1 %vm408_vm1, %v7135_v35  ;;  %4667 = vmatprep.mubr.msk.f32.mxu0 %vm408_vm1, %v5223_v20  ;;  %v5225_v35 = vld [vmem:[#allocation2 + $0xd8] sm:$0xff] }
 0x142   : > { %4906 = vmatmul.mubr.msk.f32.gmra.mrb[6].mxu1 %vm408_vm1, %v7137_v62  ;;  %4668 = vmatmul.mubr.msk.f32.gmra.mrb[46].mxu0 %vm408_vm1, %v5224_v39  ;;  %v5226_v62 = vld [vmem:[#allocation2 + $0xe0] sm:$0xff] }
 0x143   : > { %4908 = vmatprep.mubr.msk.f32.mxu1 %vm408_vm1, %v7139_v18  ;;  %4670 = vmatprep.mubr.msk.f32.mxu0 %vm408_vm1, %v5225_v35 }
 0x146   : > { %4909 = vmatmul.mubr.msk.f32.gmra.mrb[8].mxu1 %vm408_vm1, %v7141_v59  ;;  %4671 = vmatmul.mubr.msk.f32.gmra.mrb[48].mxu0 %vm408_vm1, %v5226_v62 }
 0x147   : > { %4911 = vmatprep.mubr.msk.f32.mxu1 %vm408_vm1, %v7143_v40  ;;  %4673 = vmatprep.mubr.msk.f32.mxu0 %vm408_vm1, %v7108_v0  ;;  %v3378_v0 = vrot.slane %v6507_v42, 2 }
 0x14a   : > { %4912 = vmatmul.mubr.msk.f32.gmra.mrb[10].mxu1 %vm408_vm1, %v7145_v45  ;;  %4674 = vmatmul.mubr.msk.f32.gmra.mrb[50].mxu0 %vm408_vm1, %v7109_v8 }
 0x14b   : > { %4914 = vmatprep.mubr.msk.f32.mxu1 %vm408_vm1, %v7147_v60  ;;  %4676 = vmatprep.mubr.msk.f32.mxu0 %vm408_vm1, %v7113_v63  ;;  %v3380_v63 = vrot.slane %v6676_v48, 2 }
 0x14e   : > { %4915 = vmatmul.mubr.msk.f32.gmra.mrb[12].mxu1 %vm408_vm1, %v7149_v9  ;;  %4677 = vmatmul.mubr.msk.f32.gmra.mrb[52].mxu0 %vm408_vm1, %v7114_v22 }
 0x14f   : > { %4917 = vmatprep.mubr.msk.f32.mxu1 %vm408_vm1, %v7151_v50  ;;  %4679 = vmatprep.mubr.msk.f32.mxu0 %vm408_vm1, %v7119_v29 }
 0x152   : > { %4918 = vmatmul.mubr.msk.f32.gmra.mrb[14].mxu1 %vm408_vm1, %v7153_v15  ;;  %4680 = vmatmul.mubr.msk.f32.gmra.mrb[54].mxu0 %vm408_vm1, %v7120_v5 }
 0x153   : > { %4920 = vmatprep.mubr.msk.f32.mxu1 %vm408_vm1, %v7155_v26  ;;  %4682 = vmatprep.mubr.msk.f32.mxu0 %vm408_vm1, %v7124_v1 }
 0x156   : > { %4921 = vmatmul.mubr.msk.f32.gmra.mrb[16].mxu1 %vm408_vm1, %v7157_v44  ;;  %4683 = vmatmul.mubr.msk.f32.gmra.mrb[56].mxu0 %vm408_vm1, %v7125_v11 }
 0x157   : > { %4923 = vmatprep.mubr.msk.f32.mxu1 %vm408_vm1, %v7159_v17  ;;  %4685 = vmatprep.mubr.msk.f32.mxu0 %vm408_vm1, %v7128_v49  ;;  %v3377_v49 = vrot.slane %v6497_v37, 2 }
 0x159   : > { %v3379_v29 = vsel %vm1631_vm4, %v3377_v49, %v3378_v0 }
 0x15a   : > { %4924 = vmatmul.mubr.msk.f32.gmra.mrb[18].mxu1 %vm408_vm1, %v7161_v57  ;;  %4686 = vmatmul.mubr.msk.f32.gmra.mrb[58].mxu0 %vm408_vm1, %v7129_v61 }
 0x15b   : > { %4926 = vmatprep.mubr.msk.f32.mxu1 %vm408_vm1, %v6275_v58  ;;  %4688 = vmatprep.mubr.msk.f32.mxu0 %vm408_vm1, %v5990_v41  ;;  %v3381_v41 = vsel %vm1631_vm4, %v3378_v0, %v3380_v63 }
 0x15e   : > { %4927 = vmatmul.mubr.msk.f32.gmra.mrb[20].mxu1 %vm408_vm1, %v7164_v14  ;;  %4689 = vmatmul.mubr.msk.f32.gmra.mrb[60].mxu0 %vm408_vm1, %v7131_v52 }
 0x15f   : > { %4929 = vmatprep.mubr.msk.f32.mxu1 %vm408_vm1, %v6292_v43  ;;  %4691 = vmatprep.mubr.msk.f32.mxu0 %vm408_vm1, %v6017_v53 }
 0x162   : > { %4930 = vmatmul.mubr.msk.f32.gmra.mrb[22].mxu1 %vm408_vm1, %v6303_v2  ;;  %4692 = vmatmul.mubr.msk.f32.gmra.mrb[62].mxu0 %vm408_vm1, %v6019_v38 }
 0x163   : > { %4932 = vmatprep.mubr.msk.f32.mxu1 %vm408_vm1, %v6309_v6 }
 0x166   : > { %4933 = vmatmul.mubr.msk.f32.gmra.mrb[24].mxu1 %vm408_vm1, %v6320_v16 }
 0x167   : > { %4935 = vmatprep.mubr.msk.f32.mxu1 %vm408_vm1, %v6326_v56 }
 0x16a   : > { %4936 = vmatmul.mubr.msk.f32.gmra.mrb[26].mxu1 %vm408_vm1, %v6342_v46 }
 0x16b   : > { %4938 = vmatprep.mubr.msk.f32.mxu1 %vm408_vm1, %v6348_v21 }
 0x16e   : > { %4939 = vmatmul.mubr.msk.f32.gmra.mrb[28].mxu1 %vm408_vm1, %v6361_v12 }
 0x16f   : > { %4941 = vmatprep.mubr.msk.f32.mxu1 %vm408_vm1, %v3379_v29 }
 0x172   : > { %4942 = vmatmul.mubr.msk.f32.gmra.mrb[30].mxu1 %vm408_vm1, %v3381_v41 }
 0x1f9   : > { %v4648_v38 = vpop.f32.mrb[32].mxu0 }
 0x1fa   : > { %v2111_v52 = vpop.f32.mrb[33].mxu0 }
 0x1fd   : > { %v4651_v53 = vpop.f32.mrb[34].mxu0 }
 0x1fe   : > { %v2121_v8 = vpop.f32.mrb[35].mxu0 }
 0x201   : > { %v4654_v22 = vpop.f32.mrb[36].mxu0 }
 0x202   : > { %v2131_v5 = vpop.f32.mrb[37].mxu0 }
 0x205   : > { %v4657_v1 = vpop.f32.mrb[38].mxu0 }
 0x206   : > { %v2141_v43 = vpop.f32.mrb[39].mxu0 }
 0x209   : > { %v4898_v21 = vpop.f32.mrb[0].mxu1  ;;  %v4660_v16 = vpop.f32.mrb[40].mxu0 }
 0x20a   : > { %v4944_v11 = vadd.f32 %v4898_v21, %v4648_v38  ;;  %v3455_v61 = vpop.f32.mrb[1].mxu1  ;;  %v2151_v12 = vpop.f32.mrb[41].mxu0 }
 0x20b   : > { %v4945_v58 = vadd.f32 %v3455_v61, %v2111_v52 }
 0x20c   : > { %3647 = vst.msk [vmem:[%s6825_s10 + $0x8] sm:$0xff] %vm734_vm5, %v4944_v11 }
 0x20d   : > { %3646 = vst.msk [vmem:[%s6825_s10] sm:$0xff] %vm734_vm5, %v4945_v58  ;;  %v4901_v2 = vpop.f32.mrb[2].mxu1  ;;  %v4663_v18 = vpop.f32.mrb[42].mxu0 }
 0x20e   : > { %v4946_v6 = vadd.f32 %v4901_v2, %v4651_v53  ;;  %v3465_v56 = vpop.f32.mrb[3].mxu1  ;;  %v2161_v45 = vpop.f32.mrb[43].mxu0 }
 0x20f   : > { %v4947_v46 = vadd.f32 %v3465_v56, %v2121_v8 }
 0x210   : > { %3649 = vst.msk [vmem:[%s6825_s10 + $0x18] sm:$0xff] %vm734_vm5, %v4946_v6 }
 0x211   : > { %3648 = vst.msk [vmem:[%s6825_s10 + $0x10] sm:$0xff] %vm734_vm5, %v4947_v46  ;;  %v4904_v37 = vpop.f32.mrb[4].mxu1  ;;  %v4666_v50 = vpop.f32.mrb[44].mxu0 }
 0x212   : > { %v4948_v42 = vadd.f32 %v4904_v37, %v4654_v22  ;;  %v3475_v59 = vpop.f32.mrb[5].mxu1  ;;  %v2171_v44 = vpop.f32.mrb[45].mxu0 }
 0x213   : > { %v4949_v40 = vadd.f32 %v3475_v59, %v2131_v5 }
 0x214   : > { %3651 = vst.msk [vmem:[%s6825_s10 + $0x28] sm:$0xff] %vm734_vm5, %v4948_v42 }
 0x215   : > { %3650 = vst.msk [vmem:[%s6825_s10 + $0x20] sm:$0xff] %vm734_vm5, %v4949_v40  ;;  %v4907_v60 = vpop.f32.mrb[6].mxu1  ;;  %v4669_v14 = vpop.f32.mrb[46].mxu0 }
 0x216   : > { %v4950_v9 = vadd.f32 %v4907_v60, %v4657_v1  ;;  %v3485_v15 = vpop.f32.mrb[7].mxu1  ;;  %v2181_v36 = vpop.f32.mrb[47].mxu0 }
 0x217   : > { %v4951_v26 = vadd.f32 %v3485_v15, %v2141_v43 }
 0x218   : > { %3653 = vst.msk [vmem:[%s6825_s10 + $0x38] sm:$0xff] %vm734_vm5, %v4950_v9 }
 0x219   : > { %3652 = vst.msk [vmem:[%s6825_s10 + $0x30] sm:$0xff] %vm734_vm5, %v4951_v26  ;;  %v4910_v17 = vpop.f32.mrb[8].mxu1  ;;  %v4672_v24 = vpop.f32.mrb[48].mxu0 }
 0x21a   : > { %v4952_v57 = vadd.f32 %v4910_v17, %v4660_v16  ;;  %v3495_v48 = vpop.f32.mrb[9].mxu1  ;;  %v2191_v33 = vpop.f32.mrb[49].mxu0 }
 0x21b   : > { %v4953_v28 = vadd.f32 %v3495_v48, %v2151_v12 }
 0x21c   : > { %3655 = vst.msk [vmem:[%s6825_s10 + $0x48] sm:$0xff] %vm734_vm5, %v4952_v57 }
 0x21d   : > { %3654 = vst.msk [vmem:[%s6825_s10 + $0x40] sm:$0xff] %vm734_vm5, %v4953_v28  ;;  %v4913_v4 = vpop.f32.mrb[10].mxu1  ;;  %v4675_v55 = vpop.f32.mrb[50].mxu0 }
 0x21e   : > { %v4954_v10 = vadd.f32 %v4913_v4, %v4663_v18  ;;  %v3505_v3 = vpop.f32.mrb[11].mxu1  ;;  %v2201_v54 = vpop.f32.mrb[51].mxu0 }
 0x21f   : > { %v4955_v27 = vadd.f32 %v3505_v3, %v2161_v45 }
 0x220   : > { %3657 = vst.msk [vmem:[%s6825_s10 + $0x58] sm:$0xff] %vm734_vm5, %v4954_v10 }
 0x221   : > { %3656 = vst.msk [vmem:[%s6825_s10 + $0x50] sm:$0xff] %vm734_vm5, %v4955_v27  ;;  %v4916_v32 = vpop.f32.mrb[12].mxu1  ;;  %v4678_v47 = vpop.f32.mrb[52].mxu0 }
 0x222   : > { %v4956_v30 = vadd.f32 %v4916_v32, %v4666_v50  ;;  %v3515_v51 = vpop.f32.mrb[13].mxu1  ;;  %v2211_v34 = vpop.f32.mrb[53].mxu0 }
 0x223   : > { %v4957_v23 = vadd.f32 %v3515_v51, %v2171_v44 }
 0x224   : > { %3659 = vst.msk [vmem:[%s6825_s10 + $0x68] sm:$0xff] %vm734_vm5, %v4956_v30 }
 0x225   : > { %3658 = vst.msk [vmem:[%s6825_s10 + $0x60] sm:$0xff] %vm734_vm5, %v4957_v23  ;;  %v4919_v25 = vpop.f32.mrb[14].mxu1  ;;  %v4681_v39 = vpop.f32.mrb[54].mxu0 }
 0x226   : > { %v4958_v7 = vadd.f32 %v4919_v25, %v4669_v14  ;;  %v3525_v13 = vpop.f32.mrb[15].mxu1  ;;  %v2221_v49 = vpop.f32.mrb[55].mxu0 }
 0x227   : > { %v4959_v19 = vadd.f32 %v3525_v13, %v2181_v36 }
 0x228   : > { %3661 = vst.msk [vmem:[%s6825_s10 + $0x78] sm:$0xff] %vm734_vm5, %v4958_v7 }
 0x229   : > { %3660 = vst.msk [vmem:[%s6825_s10 + $0x70] sm:$0xff] %vm734_vm5, %v4959_v19  ;;  %v4922_v31 = vpop.f32.mrb[16].mxu1  ;;  %v4684_v29 = vpop.f32.mrb[56].mxu0 }
 0x22a   : > { %v4960_v20 = vadd.f32 %v4922_v31, %v4672_v24  ;;  %v3535_v35 = vpop.f32.mrb[17].mxu1  ;;  %v2231_v52 = vpop.f32.mrb[57].mxu0 }
 0x22b   : > { %v4961_v62 = vadd.f32 %v3535_v35, %v2191_v33 }
 0x22c   : > { %3663 = vst.msk [vmem:[%s6825_s10 + $0x88] sm:$0xff] %vm734_vm5, %v4960_v20 }
 0x22d   : > { %3662 = vst.msk [vmem:[%s6825_s10 + $0x80] sm:$0xff] %vm734_vm5, %v4961_v62  ;;  %v4925_v0 = vpop.f32.mrb[18].mxu1  ;;  %v4687_v22 = vpop.f32.mrb[58].mxu0 }
 0x22e   : > { %v4962_v63 = vadd.f32 %v4925_v0, %v4675_v55  ;;  %v3545_v41 = vpop.f32.mrb[19].mxu1  ;;  %v2241_v11 = vpop.f32.mrb[59].mxu0 }
 0x22f   : > { %v4963_v38 = vadd.f32 %v3545_v41, %v2201_v54 }
 0x230   : > { %3665 = vst.msk [vmem:[%s6825_s10 + $0x98] sm:$0xff] %vm734_vm5, %v4962_v63 }
 0x231   : > { %3664 = vst.msk [vmem:[%s6825_s10 + $0x90] sm:$0xff] %vm734_vm5, %v4963_v38  ;;  %v4928_v53 = vpop.f32.mrb[20].mxu1  ;;  %v4690_v58 = vpop.f32.mrb[60].mxu0 }
 0x232   : > { %v4964_v8 = vadd.f32 %v4928_v53, %v4678_v47  ;;  %v3555_v5 = vpop.f32.mrb[21].mxu1  ;;  %v2251_v6 = vpop.f32.mrb[61].mxu0 }
 0x233   : > { %v4965_v21 = vadd.f32 %v3555_v5, %v2211_v34 }
 0x234   : > { %3667 = vst.msk [vmem:[%s6825_s10 + $0xa8] sm:$0xff] %vm734_vm5, %v4964_v8 }
 0x235   : > { %3666 = vst.msk [vmem:[%s6825_s10 + $0xa0] sm:$0xff] %vm734_vm5, %v4965_v21  ;;  %v4931_v1 = vpop.f32.mrb[22].mxu1  ;;  %v4693_v46 = vpop.f32.mrb[62].mxu0 }
 0x236   : > { %v4966_v61 = vadd.f32 %v4931_v1, %v4681_v39  ;;  %v3565_v43 = vpop.f32.mrb[23].mxu1  ;;  %v2261_v42 = vpop.f32.mrb[63].mxu0 }
 0x237   : > { %v4967_v2 = vadd.f32 %v3565_v43, %v2221_v49 }
 0x238   : > { %3669 = vst.msk [vmem:[%s6825_s10 + $0xb8] sm:$0xff] %vm734_vm5, %v4966_v61 }
 0x239   : > { %3668 = vst.msk [vmem:[%s6825_s10 + $0xb0] sm:$0xff] %vm734_vm5, %v4967_v2  ;;  %v4934_v16 = vpop.f32.mrb[24].mxu1 }
 0x23a   : > { %v4968_v56 = vadd.f32 %v4934_v16, %v4684_v29  ;;  %v3575_v12 = vpop.f32.mrb[25].mxu1 }
 0x23b   : > { %v4969_v37 = vadd.f32 %v3575_v12, %v2231_v52 }
 0x23c   : > { %3671 = vst.msk [vmem:[%s6825_s10 + $0xc8] sm:$0xff] %vm734_vm5, %v4968_v56 }
 0x23d   : > { %3670 = vst.msk [vmem:[%s6825_s10 + $0xc0] sm:$0xff] %vm734_vm5, %v4969_v37  ;;  %v4937_v18 = vpop.f32.mrb[26].mxu1 }
 0x23e   : > { %v4970_v59 = vadd.f32 %v4937_v18, %v4687_v22  ;;  %v3585_v40 = vpop.f32.mrb[27].mxu1 }
 0x23f   : > { %v4971_v45 = vadd.f32 %v3585_v40, %v2241_v11 }
 0x240   : > { %3673 = vst.msk [vmem:[%s6825_s10 + $0xd8] sm:$0xff] %vm734_vm5, %v4970_v59 }
 0x241   : > { %3672 = vst.msk [vmem:[%s6825_s10 + $0xd0] sm:$0xff] %vm734_vm5, %v4971_v45  ;;  %v4940_v60 = vpop.f32.mrb[28].mxu1 }
 0x242   : > { %v4972_v9 = vadd.f32 %v4940_v60, %v4690_v58  ;;  %v3595_v50 = vpop.f32.mrb[29].mxu1 }
 0x243   : > { %v4973_v15 = vadd.f32 %v3595_v50, %v2251_v6 }
 0x244   : > { %3675 = vst.msk [vmem:[%s6825_s10 + $0xe8] sm:$0xff] %vm734_vm5, %v4972_v9 }
 0x245   : > { %3674 = vst.msk [vmem:[%s6825_s10 + $0xe0] sm:$0xff] %vm734_vm5, %v4973_v15  ;;  %v4943_v26 = vpop.f32.mrb[30].mxu1 }
 0x246   : > { %v4974_v44 = vadd.f32 %v4943_v26, %v4693_v46  ;;  %v3605_v17 = vpop.f32.mrb[31].mxu1 }
 0x247   : > { %v4975_v57 = vadd.f32 %v3605_v17, %v2261_v42 }
 0x248   : > { %3677 = vst.msk [vmem:[%s6825_s10 + $0xf8] sm:$0xff] %vm734_vm5, %v4974_v44 }
 0x249   : > { %3676 = vst.msk [vmem:[%s6825_s10 + $0xf0] sm:$0xff] %vm734_vm5, %v4975_v57 }
 0x24a PF: > { %s17_s21 = sadd.s32 1, %s5233_s21  }
 0x24b   : > { %p14_p4 = scmp.ge.s32.totalorder %s17_s21, 4  }
 0x24d   :  { %16 = sbr.rel (!%p14_p4) target bundleno = 1 (0x1), region = 83 }

</bundles_post_ra>
